<compile_context>
chip_gen: v5e
topology: v5e:2x2
jax: 0.10.0
libtpu: 0.0.40
codegen_flags: <defaults>
</compile_context>

<pallas_src>
import jax
import jax.numpy as jnp
from jax.experimental import pallas as pl
from jax.experimental.pallas import tpu as pltpu

LANE = 128  # TPU lane width; hidden dim is chosen equal to it in the demo


# ---------------------------------------------------------------------------
# parameter init (PyTorch nn.Linear style: U(-1/sqrt(fan_in), 1/sqrt(fan_in)))
# ---------------------------------------------------------------------------
def init_params(key, S, H, Z):
    names = [("se1", S, H), ("se2", H, H),
             ("z1", Z, H), ("z2", H, H),
             ("sh1", 2 * H, H), ("sh2", H, H),
             ("m", H, Z), ("v", H, Z),
             ("d1", Z, H), ("d2", H, H), ("d3", H, H), ("d4", H, S),
             ("r", H, S)]
    keys = jax.random.split(key, len(names))
    p = {}
    for k, (n, fi, fo) in zip(keys, names):
        kw, kb = jax.random.split(k)
        bound = 1.0 / float(fi) ** 0.5
        p["w_" + n] = jax.random.uniform(kw, (fi, fo), jnp.float32, -bound, bound)
        p["b_" + n] = jax.random.uniform(kb, (fo,), jnp.float32, -bound, bound)
    return p


# ---------------------------------------------------------------------------
# pack per-layer weights/biases into two lane-dense slabs
# ---------------------------------------------------------------------------
def _pad2(x, rows, cols):
    r, c = x.shape
    return jnp.pad(x, ((0, rows - r), (0, cols - c)))


def pack_actor_params(p, S, H, Z):
    assert H == LANE, "this packing assumes hidden_dim == 128 (lane width)"
    assert 2 * Z <= LANE and Z % 8 == 0
    SP = 8  # state feature dim padded to a sublane multiple

    w_sh1a = p["w_sh1"][:H]   # acts on encoded_state (per-batch, stays in-kernel)
    w_sh1b = p["w_sh1"][H:]   # acts on encoded_z (batch-invariant, hoisted)
    w_mv = jnp.concatenate([p["w_m"], p["w_v"]], axis=1)   # fused mean|log_var head
    b_mv = jnp.concatenate([p["b_m"], p["b_v"]], axis=0)

    blocks = [("se1", p["w_se1"], SP), ("se2", p["w_se2"], H),
              ("sh1a", w_sh1a, H), ("sh2", p["w_sh2"], H),
              ("mv", w_mv, H),
              ("d1", p["w_d1"], Z), ("d2", p["w_d2"], H),
              ("d3", p["w_d3"], H), ("d4", p["w_d4"], H),
              ("r", p["w_r"], H)]
    w_off, parts, rows = {}, [], 0
    for name, w, prow in blocks:           # every offset is a multiple of 8
        w_off[name] = rows
        parts.append(_pad2(w, prow, LANE))
        rows += prow
    w_slab = jnp.concatenate(parts, axis=0)              # (rows, 128), one DMA

    bias_names = ["se1", "se2", "sh1", "sh2", "mv", "d1", "d2", "d3", "d4", "r"]
    b_rows = []
    for n in bias_names:
        b = b_mv if n == "mv" else p["b_" + n]
        b_rows.append(jnp.pad(b, (0, LANE - b.shape[0]))[None, :])
    pad_rows = (-len(bias_names)) % 8
    if pad_rows:
        b_rows.append(jnp.zeros((pad_rows, LANE), jnp.float32))
    b_slab = jnp.concatenate(b_rows, axis=0)              # (16, 128), one DMA
    b_idx = {n: i for i, n in enumerate(bias_names)}

    return dict(w_slab=w_slab, b_slab=b_slab, w_off=w_off, b_idx=b_idx,
                # batch-invariant z path, evaluated once per call outside the kernel
                w_z1=p["w_z1"], b_z1=p["b_z1"], w_z2=p["w_z2"], b_z2=p["b_z2"],
                w_sh1b=w_sh1b,
                dims=dict(S=S, SP=SP, H=H, Z=Z))


# ---------------------------------------------------------------------------
# fused Pallas kernel (one batch tile per grid step)
# ---------------------------------------------------------------------------
def _build_kernel(w_off, b_idx, dims):
    SP, H, Z = dims["SP"], dims["H"], dims["Z"]

    def kernel(state_ref, eps_ref, zctx_ref, w_ref, b_ref, out_ref):
        relu = lambda x: jnp.maximum(x, 0.0)
        dot = lambda a, w: jnp.dot(a, w, preferred_element_type=jnp.float32)
        wgt = lambda name, rows: w_ref[w_off[name]:w_off[name] + rows, :]

        b_all = b_ref[...]                                   # load biases once
        bias = lambda name: b_all[b_idx[name]:b_idx[name] + 1, :]

        # state_encoder: Linear -> ReLU -> Linear -> ReLU
        s = state_ref[...]                                              # (T, SP)
        h = relu(dot(s, wgt("se1", SP)) + bias("se1"))
        enc_s = relu(dot(h, wgt("se2", H)) + bias("se2"))               # (T, H)

        # shared_encoder on concat([enc_s, enc_z]); the enc_z @ W_sh1b piece is
        # batch-invariant and arrives precomputed as zctx (broadcast over rows).
        sh = relu(dot(enc_s, wgt("sh1a", H)) + zctx_ref[...] + bias("sh1"))
        enc = relu(dot(sh, wgt("sh2", H)) + bias("sh2"))                # (T, H)

        # fused mean | log_var head + reparameterize (eps supplied by caller)
        head = dot(enc, wgt("mv", H)) + bias("mv")                      # (T, 2Z)
        mean, log_var = head[:, :Z], head[:, Z:2 * Z]
        z_s = mean + eps_ref[...] * jnp.exp(0.5 * log_var)              # (T, Z)

        # decoder: 3x (Linear -> ReLU) -> Linear -> Sigmoid
        d = relu(dot(z_s, wgt("d1", Z)) + bias("d1"))
        d = relu(dot(d, wgt("d2", H)) + bias("d2"))
        d = relu(dot(d, wgt("d3", H)) + bias("d3"))
        decoded = jax.nn.sigmoid(dot(d, wgt("d4", H)) + bias("d4"))     # (T, 128)

        # residual_part on encoded_state (output cols padded S -> 128)
        residual = relu(dot(enc_s, wgt("r", H)) + bias("r"))            # (T, 128)

        out_ref[...] = decoded + residual        # lane-dense store; slice outside

    return kernel


def actor_forward(state, z, eps, packed):
    dims = packed["dims"]
    S, SP, H, Z = dims["S"], dims["SP"], dims["H"], dims["Z"]
    B = state.shape[0]
    TILE_B = min(128, B)
    assert B % TILE_B == 0, "demo assumes batch divisible by the batch tile"

    # ---- batch-invariant z path (hoisted out of the kernel, plain XLA) ----
    relu = lambda x: jnp.maximum(x, 0.0)
    enc_z = relu(z[None, :] @ packed["w_z1"] + packed["b_z1"])
    enc_z = relu(enc_z @ packed["w_z2"] + packed["b_z2"])               # (1, H)
    z_ctx = enc_z @ packed["w_sh1b"]                                    # (1, H)

    state_pad = jnp.pad(state, ((0, 0), (0, SP - S)))                   # (B, SP)
    w_slab, b_slab = packed["w_slab"], packed["b_slab"]
    kernel = _build_kernel(packed["w_off"], packed["b_idx"], dims)

    out_pad = pl.pallas_call(
        kernel,
        out_shape=jax.ShapeDtypeStruct((B, LANE), jnp.float32),
        grid_spec=pltpu.PrefetchScalarGridSpec(
            num_scalar_prefetch=0,
            grid=(B // TILE_B,),
            in_specs=[
                pl.BlockSpec((TILE_B, SP), lambda i: (i, 0)),    # state tile
                pl.BlockSpec((TILE_B, Z), lambda i: (i, 0)),     # eps tile
                pl.BlockSpec((1, H), lambda i: (0, 0)),          # z context (resident)
                pl.BlockSpec(w_slab.shape, lambda i: (0, 0)),    # weight slab (resident)
                pl.BlockSpec(b_slab.shape, lambda i: (0, 0)),    # bias slab (resident)
            ],
            out_specs=pl.BlockSpec((TILE_B, LANE), lambda i: (i, 0)),
        ),
        compiler_params=pltpu.CompilerParams(
            dimension_semantics=("parallel",)),   # megacore split on v7x
    )(state_pad, eps, z_ctx, w_slab, b_slab)

    return out_pad[:, :S]


# ---------------------------------------------------------------------------
# pure-JAX reference (mirrors the PyTorch forward, float32)
# ---------------------------------------------------------------------------
def actor_reference(state, z, eps, p):
    relu = lambda x: jnp.maximum(x, 0.0)
    enc_s = relu(relu(state @ p["w_se1"] + p["b_se1"]) @ p["w_se2"] + p["b_se2"])
    enc_z = relu(relu(z @ p["w_z1"] + p["b_z1"]) @ p["w_z2"] + p["b_z2"])
    enc_z = jnp.broadcast_to(enc_z[None, :], enc_s.shape)
    cat = jnp.concatenate([enc_s, enc_z], axis=-1)
    enc = relu(relu(cat @ p["w_sh1"] + p["b_sh1"]) @ p["w_sh2"] + p["b_sh2"])
    mean = enc @ p["w_m"] + p["b_m"]
    log_var = enc @ p["w_v"] + p["b_v"]
    z_s = mean + eps * jnp.exp(0.5 * log_var)
    d = relu(z_s @ p["w_d1"] + p["b_d1"])
    d = relu(d @ p["w_d2"] + p["b_d2"])
    d = relu(d @ p["w_d3"] + p["b_d3"])
    decoded = jax.nn.sigmoid(d @ p["w_d4"] + p["b_d4"])
    residual = relu(enc_s @ p["w_r"] + p["b_r"])
    return decoded + residual


if __name__ == "__main__":
    # Small shapes consistent with the module (state_dim=6, hidden_dim, z_dim);
    # batch sized to exercise the batch grid / megacore path.
    B, S, H, Z = 256, 6, 128, 64
    key = jax.random.PRNGKey(0)
    k_state, k_z, k_eps, k_params = jax.random.split(key, 4)

    state = jax.random.normal(k_state, (B, S), jnp.float32)
    z = jax.random.normal(k_z, (Z,), jnp.float32)
    # torch.randn_like noise of reparameterize() is supplied deterministically
    eps = jax.random.normal(k_eps, (B, Z), jnp.float32)

    params = init_params(k_params, S, H, Z)
    packed = pack_actor_params(params, S, H, Z)

    out = actor_forward(state, z, eps, packed)
    jax.block_until_ready(out)
    assert out.shape == (B, S) and out.dtype == jnp.float32

    ref = actor_reference(state, z, eps, params)
    err = float(jnp.max(jnp.abs(out - ref)))
    assert err < 2e-2, f"max abs err vs reference: {err}"
    print("KERNEL_OK")
</pallas_src>

<mosaic_0001>
module attributes {stable_mosaic.version = 11 : i64} {
  func.func @kernel(%arg0: i32, %arg1: memref<128x8xf32, #tpu.memory_space<vmem>>, %arg2: memref<128x64xf32, #tpu.memory_space<vmem>>, %arg3: memref<1x128xf32, #tpu.memory_space<vmem>>, %arg4: memref<1096x128xf32, #tpu.memory_space<vmem>>, %arg5: memref<16x128xf32, #tpu.memory_space<vmem>>, %arg6: memref<128x128xf32, #tpu.memory_space<vmem>>) attributes {dimension_semantics = [#tpu.dimension_semantics<parallel>], iteration_bounds = array<i64: 2>, scalar_prefetch = 0 : i64, scratch_operands = 0 : i64, tpu.core_type = #tpu.core_type<tc>, window_params = [{transform_indices = @transform_0, window_bounds = array<i64: 128, 8>}, {transform_indices = @transform_1, window_bounds = array<i64: 128, 64>}, {pipeline_mode = #tpu.pipeline_mode<synchronous>, transform_indices = @transform_2, window_bounds = array<i64: 1, 128>}, {pipeline_mode = #tpu.pipeline_mode<synchronous>, transform_indices = @transform_3, window_bounds = array<i64: 1096, 128>}, {pipeline_mode = #tpu.pipeline_mode<synchronous>, transform_indices = @transform_4, window_bounds = array<i64: 16, 128>}, {transform_indices = @transform_5, window_bounds = array<i64: 128, 128>}]} {
    %c0 = arith.constant 0 : index
    %c0_0 = arith.constant 0 : index
    %0 = vector.load %arg5[%c0, %c0_0] : memref<16x128xf32, #tpu.memory_space<vmem>>, vector<16x128xf32>
    %c0_1 = arith.constant 0 : index
    %c0_2 = arith.constant 0 : index
    %1 = vector.load %arg1[%c0_1, %c0_2] : memref<128x8xf32, #tpu.memory_space<vmem>>, vector<128x8xf32>
    %c0_3 = arith.constant 0 : index
    %c0_4 = arith.constant 0 : index
    %2 = vector.load %arg4[%c0_3, %c0_4] : memref<1096x128xf32, #tpu.memory_space<vmem>>, vector<8x128xf32>
    %cst = arith.constant dense<0.000000e+00> : vector<128x128xf32>
    %3 = tpu.matmul %1, %2, %cst {dimension_numbers = #tpu.dot_dimension_numbers<[1], [0], [0], [1], [0, 0, 1, 1], [], []>} : vector<128x8xf32>, vector<8x128xf32>, vector<128x128xf32> -> vector<128x128xf32>
    %4 = vector.extract_strided_slice %0 {offsets = [0, 0], sizes = [1, 128], strides = [1, 1]} : vector<16x128xf32> to vector<1x128xf32>
    %5 = vector.broadcast %4 : vector<1x128xf32> to vector<128x128xf32>
    %6 = arith.addf %3, %5 : vector<128x128xf32>
    %cst_5 = arith.constant 0.000000e+00 : f32
    %7 = vector.broadcast %cst_5 : f32 to vector<128x128xf32>
    %8 = arith.maximumf %6, %7 : vector<128x128xf32>
    %c8 = arith.constant 8 : index
    %c0_6 = arith.constant 0 : index
    %9 = vector.load %arg4[%c8, %c0_6] : memref<1096x128xf32, #tpu.memory_space<vmem>>, vector<128x128xf32>
    %cst_7 = arith.constant dense<0.000000e+00> : vector<128x128xf32>
    %10 = tpu.matmul %8, %9, %cst_7 {dimension_numbers = #tpu.dot_dimension_numbers<[1], [0], [0], [1], [0, 0, 1, 1], [], []>} : vector<128x128xf32>, vector<128x128xf32>, vector<128x128xf32> -> vector<128x128xf32>
    %11 = vector.extract_strided_slice %0 {offsets = [1, 0], sizes = [1, 128], strides = [1, 1]} : vector<16x128xf32> to vector<1x128xf32>
    %12 = vector.broadcast %11 : vector<1x128xf32> to vector<128x128xf32>
    %13 = arith.addf %10, %12 : vector<128x128xf32>
    %cst_8 = arith.constant 0.000000e+00 : f32
    %14 = vector.broadcast %cst_8 : f32 to vector<128x128xf32>
    %15 = arith.maximumf %13, %14 : vector<128x128xf32>
    %c136 = arith.constant 136 : index
    %c0_9 = arith.constant 0 : index
    %16 = vector.load %arg4[%c136, %c0_9] : memref<1096x128xf32, #tpu.memory_space<vmem>>, vector<128x128xf32>
    %cst_10 = arith.constant dense<0.000000e+00> : vector<128x128xf32>
    %17 = tpu.matmul %15, %16, %cst_10 {dimension_numbers = #tpu.dot_dimension_numbers<[1], [0], [0], [1], [0, 0, 1, 1], [], []>} : vector<128x128xf32>, vector<128x128xf32>, vector<128x128xf32> -> vector<128x128xf32>
    %c0_11 = arith.constant 0 : index
    %c0_12 = arith.constant 0 : index
    %18 = vector.load %arg3[%c0_11, %c0_12] : memref<1x128xf32, #tpu.memory_space<vmem>>, vector<1x128xf32>
    %19 = vector.broadcast %18 : vector<1x128xf32> to vector<128x128xf32>
    %20 = arith.addf %17, %19 : vector<128x128xf32>
    %21 = vector.extract_strided_slice %0 {offsets = [2, 0], sizes = [1, 128], strides = [1, 1]} : vector<16x128xf32> to vector<1x128xf32>
    %22 = vector.broadcast %21 : vector<1x128xf32> to vector<128x128xf32>
    %23 = arith.addf %20, %22 : vector<128x128xf32>
    %cst_13 = arith.constant 0.000000e+00 : f32
    %24 = vector.broadcast %cst_13 : f32 to vector<128x128xf32>
    %25 = arith.maximumf %23, %24 : vector<128x128xf32>
    %c264 = arith.constant 264 : index
    %c0_14 = arith.constant 0 : index
    %26 = vector.load %arg4[%c264, %c0_14] : memref<1096x128xf32, #tpu.memory_space<vmem>>, vector<128x128xf32>
    %cst_15 = arith.constant dense<0.000000e+00> : vector<128x128xf32>
    %27 = tpu.matmul %25, %26, %cst_15 {dimension_numbers = #tpu.dot_dimension_numbers<[1], [0], [0], [1], [0, 0, 1, 1], [], []>} : vector<128x128xf32>, vector<128x128xf32>, vector<128x128xf32> -> vector<128x128xf32>
    %28 = vector.extract_strided_slice %0 {offsets = [3, 0], sizes = [1, 128], strides = [1, 1]} : vector<16x128xf32> to vector<1x128xf32>
    %29 = vector.broadcast %28 : vector<1x128xf32> to vector<128x128xf32>
    %30 = arith.addf %27, %29 : vector<128x128xf32>
    %cst_16 = arith.constant 0.000000e+00 : f32
    %31 = vector.broadcast %cst_16 : f32 to vector<128x128xf32>
    %32 = arith.maximumf %30, %31 : vector<128x128xf32>
    %c392 = arith.constant 392 : index
    %c0_17 = arith.constant 0 : index
    %33 = vector.load %arg4[%c392, %c0_17] : memref<1096x128xf32, #tpu.memory_space<vmem>>, vector<128x128xf32>
    %cst_18 = arith.constant dense<0.000000e+00> : vector<128x128xf32>
    %34 = tpu.matmul %32, %33, %cst_18 {dimension_numbers = #tpu.dot_dimension_numbers<[1], [0], [0], [1], [0, 0, 1, 1], [], []>} : vector<128x128xf32>, vector<128x128xf32>, vector<128x128xf32> -> vector<128x128xf32>
    %35 = vector.extract_strided_slice %0 {offsets = [4, 0], sizes = [1, 128], strides = [1, 1]} : vector<16x128xf32> to vector<1x128xf32>
    %36 = vector.broadcast %35 : vector<1x128xf32> to vector<128x128xf32>
    %37 = arith.addf %34, %36 : vector<128x128xf32>
    %38 = vector.extract_strided_slice %37 {offsets = [0, 0], sizes = [128, 64], strides = [1, 1]} : vector<128x128xf32> to vector<128x64xf32>
    %39 = vector.extract_strided_slice %37 {offsets = [0, 64], sizes = [128, 64], strides = [1, 1]} : vector<128x128xf32> to vector<128x64xf32>
    %c0_19 = arith.constant 0 : index
    %c0_20 = arith.constant 0 : index
    %40 = vector.load %arg2[%c0_19, %c0_20] : memref<128x64xf32, #tpu.memory_space<vmem>>, vector<128x64xf32>
    %cst_21 = arith.constant 5.000000e-01 : f32
    %41 = vector.broadcast %cst_21 : f32 to vector<128x64xf32>
    %42 = arith.mulf %41, %39 : vector<128x64xf32>
    %43 = math.exp %42 : vector<128x64xf32>
    %44 = arith.mulf %40, %43 : vector<128x64xf32>
    %45 = arith.addf %38, %44 : vector<128x64xf32>
    %c520 = arith.constant 520 : index
    %c0_22 = arith.constant 0 : index
    %46 = vector.load %arg4[%c520, %c0_22] : memref<1096x128xf32, #tpu.memory_space<vmem>>, vector<64x128xf32>
    %cst_23 = arith.constant dense<0.000000e+00> : vector<128x128xf32>
    %47 = tpu.matmul %45, %46, %cst_23 {dimension_numbers = #tpu.dot_dimension_numbers<[1], [0], [0], [1], [0, 0, 1, 1], [], []>} : vector<128x64xf32>, vector<64x128xf32>, vector<128x128xf32> -> vector<128x128xf32>
    %48 = vector.extract_strided_slice %0 {offsets = [5, 0], sizes = [1, 128], strides = [1, 1]} : vector<16x128xf32> to vector<1x128xf32>
    %49 = vector.broadcast %48 : vector<1x128xf32> to vector<128x128xf32>
    %50 = arith.addf %47, %49 : vector<128x128xf32>
    %cst_24 = arith.constant 0.000000e+00 : f32
    %51 = vector.broadcast %cst_24 : f32 to vector<128x128xf32>
    %52 = arith.maximumf %50, %51 : vector<128x128xf32>
    %c584 = arith.constant 584 : index
    %c0_25 = arith.constant 0 : index
    %53 = vector.load %arg4[%c584, %c0_25] : memref<1096x128xf32, #tpu.memory_space<vmem>>, vector<128x128xf32>
    %cst_26 = arith.constant dense<0.000000e+00> : vector<128x128xf32>
    %54 = tpu.matmul %52, %53, %cst_26 {dimension_numbers = #tpu.dot_dimension_numbers<[1], [0], [0], [1], [0, 0, 1, 1], [], []>} : vector<128x128xf32>, vector<128x128xf32>, vector<128x128xf32> -> vector<128x128xf32>
    %55 = vector.extract_strided_slice %0 {offsets = [6, 0], sizes = [1, 128], strides = [1, 1]} : vector<16x128xf32> to vector<1x128xf32>
    %56 = vector.broadcast %55 : vector<1x128xf32> to vector<128x128xf32>
    %57 = arith.addf %54, %56 : vector<128x128xf32>
    %cst_27 = arith.constant 0.000000e+00 : f32
    %58 = vector.broadcast %cst_27 : f32 to vector<128x128xf32>
    %59 = arith.maximumf %57, %58 : vector<128x128xf32>
    %c712 = arith.constant 712 : index
    %c0_28 = arith.constant 0 : index
    %60 = vector.load %arg4[%c712, %c0_28] : memref<1096x128xf32, #tpu.memory_space<vmem>>, vector<128x128xf32>
    %cst_29 = arith.constant dense<0.000000e+00> : vector<128x128xf32>
    %61 = tpu.matmul %59, %60, %cst_29 {dimension_numbers = #tpu.dot_dimension_numbers<[1], [0], [0], [1], [0, 0, 1, 1], [], []>} : vector<128x128xf32>, vector<128x128xf32>, vector<128x128xf32> -> vector<128x128xf32>
    %62 = vector.extract_strided_slice %0 {offsets = [7, 0], sizes = [1, 128], strides = [1, 1]} : vector<16x128xf32> to vector<1x128xf32>
    %63 = vector.broadcast %62 : vector<1x128xf32> to vector<128x128xf32>
    %64 = arith.addf %61, %63 : vector<128x128xf32>
    %cst_30 = arith.constant 0.000000e+00 : f32
    %65 = vector.broadcast %cst_30 : f32 to vector<128x128xf32>
    %66 = arith.maximumf %64, %65 : vector<128x128xf32>
    %c840 = arith.constant 840 : index
    %c0_31 = arith.constant 0 : index
    %67 = vector.load %arg4[%c840, %c0_31] : memref<1096x128xf32, #tpu.memory_space<vmem>>, vector<128x128xf32>
    %cst_32 = arith.constant dense<0.000000e+00> : vector<128x128xf32>
    %68 = tpu.matmul %66, %67, %cst_32 {dimension_numbers = #tpu.dot_dimension_numbers<[1], [0], [0], [1], [0, 0, 1, 1], [], []>} : vector<128x128xf32>, vector<128x128xf32>, vector<128x128xf32> -> vector<128x128xf32>
    %69 = vector.extract_strided_slice %0 {offsets = [8, 0], sizes = [1, 128], strides = [1, 1]} : vector<16x128xf32> to vector<1x128xf32>
    %70 = vector.broadcast %69 : vector<1x128xf32> to vector<128x128xf32>
    %71 = arith.addf %68, %70 : vector<128x128xf32>
    %72 = arith.negf %71 : vector<128x128xf32>
    %73 = math.exp %72 : vector<128x128xf32>
    %cst_33 = arith.constant 1.000000e+00 : f32
    %74 = vector.broadcast %cst_33 : f32 to vector<128x128xf32>
    %75 = arith.addf %74, %73 : vector<128x128xf32>
    %76 = arith.divf %74, %75 : vector<128x128xf32>
    %c968 = arith.constant 968 : index
    %c0_34 = arith.constant 0 : index
    %77 = vector.load %arg4[%c968, %c0_34] : memref<1096x128xf32, #tpu.memory_space<vmem>>, vector<128x128xf32>
    %cst_35 = arith.constant dense<0.000000e+00> : vector<128x128xf32>
    %78 = tpu.matmul %15, %77, %cst_35 {dimension_numbers = #tpu.dot_dimension_numbers<[1], [0], [0], [1], [0, 0, 1, 1], [], []>} : vector<128x128xf32>, vector<128x128xf32>, vector<128x128xf32> -> vector<128x128xf32>
    %79 = vector.extract_strided_slice %0 {offsets = [9, 0], sizes = [1, 128], strides = [1, 1]} : vector<16x128xf32> to vector<1x128xf32>
    %80 = vector.broadcast %79 : vector<1x128xf32> to vector<128x128xf32>
    %81 = arith.addf %78, %80 : vector<128x128xf32>
    %cst_36 = arith.constant 0.000000e+00 : f32
    %82 = vector.broadcast %cst_36 : f32 to vector<128x128xf32>
    %83 = arith.maximumf %81, %82 : vector<128x128xf32>
    %84 = arith.addf %76, %83 : vector<128x128xf32>
    %c0_37 = arith.constant 0 : index
    %c0_38 = arith.constant 0 : index
    %85 = vector.load %arg6[%c0_37, %c0_38] : memref<128x128xf32, #tpu.memory_space<vmem>>, vector<128x128xf32>
    tpu.vector_store %arg6[%c0_37, %c0_38], %84 {strides = array<i32>} : memref<128x128xf32, #tpu.memory_space<vmem>>, vector<128x128xf32>,
    return
  }
  func.func @transform_0(%arg0: i32) -> (i32, i32) {
    %c0_i32 = arith.constant 0 : i32
    %c0_i32_0 = arith.constant 0 : i32
    return %arg0, %c0_i32 : i32, i32
  }
  func.func @transform_1(%arg0: i32) -> (i32, i32) {
    %c0_i32 = arith.constant 0 : i32
    %c0_i32_0 = arith.constant 0 : i32
    return %arg0, %c0_i32 : i32, i32
  }
  func.func @transform_2(%arg0: i32) -> (i32, i32) {
    %c0_i32 = arith.constant 0 : i32
    %c0_i32_0 = arith.constant 0 : i32
    %c0_i32_1 = arith.constant 0 : i32
    return %c0_i32, %c0_i32_0 : i32, i32
  }
  func.func @transform_3(%arg0: i32) -> (i32, i32) {
    %c0_i32 = arith.constant 0 : i32
    %c0_i32_0 = arith.constant 0 : i32
    %c0_i32_1 = arith.constant 0 : i32
    return %c0_i32, %c0_i32_0 : i32, i32
  }
  func.func @transform_4(%arg0: i32) -> (i32, i32) {
    %c0_i32 = arith.constant 0 : i32
    %c0_i32_0 = arith.constant 0 : i32
    %c0_i32_1 = arith.constant 0 : i32
    return %c0_i32, %c0_i32_0 : i32, i32
  }
  func.func @transform_5(%arg0: i32) -> (i32, i32) {
    %c0_i32 = arith.constant 0 : i32
    %c0_i32_0 = arith.constant 0 : i32
    return %arg0, %c0_i32 : i32, i32
  }
}

</mosaic_0001>

<bundles_post_ra>
// kernel: tpu_custom_call.1
= control target key start
LH: loop header
LB: loop body
LE: loop exit
PB: predicated region body
PF: predicated region fallthrough
CT: control target
= control target key end

     0   :  { %10 = vsyncpa [#allocation3], 0  ;;  %s2917_s0 = inlined_call_operand.vmem [shape: f32[256,8], index: 0, kind: input, shape index: {}]   ;;  %s2918_s1 = inlined_call_operand.vmem [shape: f32[256,64], index: 1, kind: input, shape index: {}]   ;;  %s2919_s2 = inlined_call_operand.vmem [shape: f32[1,128], index: 2, kind: input, shape index: {}]   ;;  %s2920_s3 = inlined_call_operand.hbm [shape: f32[1096,128], index: 3, kind: input, shape index: {}]   ;;  %s2921_s4 = inlined_call_operand.vmem [shape: f32[16,128], index: 4, kind: input, shape index: {}]   ;;  %s2922_s5 = inlined_call_operand.hbm [shape: f32[256,128], index: 5, kind: output, shape index: {}]  }
   0x1   :  { %11 = vsyncpa [#allocation4], 0 }
   0x2   :  { %13 = vsyncpa [#allocation4 + $0x1], 0  ;;  %s2326_s18 = smov 0   ;;  %s2328_s19 = smov 0  }
   0x3   :  { %s2330_s20 = smov 0   ;;  %s2332_s21 = smov 0  }
   0x4 LB: > { %s2347_s22 = sadd.s32 4294967295, %s2288_s21   ;;  %s1924_s23 = sadd.s32 4294967294, %s2288_s21   ;;  %s2288_s21 = sphi %s2332_s21, %s2928_s21   ;;  %s2284_s20 = sphi %s2330_s20, %s2927_s20   ;;  %s2280_s19 = sphi %s2328_s19, %s2926_s19   ;;  %s2276_s18 = sphi %s2326_s18, %s2925_s18  }
   0x5   : > { %s2351_s24 = sadd.s32 1, %s2288_s21   ;;  %s141_s25 = sadd.s32 1, %s2284_s20 }
   0x6   : > { %s138_s26 = ssub.s32 %s2288_s21, %s2351_s24  ;;  %p151_p0 = scmp.ne.s32.totalorder %s2284_s20, %s2280_s19 }
   0x7   : > { %p139_p1 = scmp.eq.s32.totalorder %s138_s26, 0  ;;  %p152_p2 = scmp.eq.s32.totalorder %s2347_s22, 1 }
   0x8   : > { %p157_p3 = scmp.ne.s32.totalorder %s2280_s19, %s2276_s18  ;;  %p158_p4 = scmp.eq.s32.totalorder %s1924_s23, 1 }
   0x9   : > { %s2362_s27 = scalar_select %p139_p1, %s2284_s20, %s141_s25  }
   0xa   : > { %p2364_p5 = por %p152_p2, %p151_p0  ;;  %p2368_p6 = por %p158_p4, %p157_p3 }
   0xb   : > { %p1925_p7 = scmp.ge.s32.totalorder %s2288_s21, 1  ;;  %p165_p8 = scmp.lt.s32.totalorder %s2288_s21, 3 }
   0xc   : > { %p2053_p9 = scmp.eq.s32.totalorder %s2347_s22, 0  ;;  %s179_s7 = sshll.u32 %s2920_s3, 4  ;;  %s180_s7 = int_to_ptr.hbm [resolvable:$true] %s179_s7 }
   0xd   : > { %p166_p10 = pnand %p1925_p7, %p165_p8  ;;  %s2290_s8 = smov [#allocation2]  }
   0xe   : > { %s181_s9 = sshll.u32 %s2290_s8, 4  ;;  %s2291_s10 = smov 128   ;;  %s182_s9 = int_to_ptr.vmem [resolvable:$true] %s181_s9 }
   0xf   : > { %p2045_p11 = pneg %p166_p10  ;;  %s2292_s11 = smov 8  }
  0x10   : > { %218 = sbr.rel (%p166_p10) target bundleno = 1511 (0x5e7), region = 40 }
  0x11   : > { %p2046_p12 = pnand %p2053_p9, %p2045_p11 }
  0x13   : > { %2048 = dma.hbm_to_vmem [thread:$0]  (!%p2046_p12), %s180_s7, 17536, %s182_s9, [#allocation3], %s2291_s10, %s2291_s10, %s2292_s11  }
  0x15   : > { %2267 = dma.done.wait (%p2053_p9), [#allocation3], 17536  }
  0x16   : > { %2269 = vsyncadd (%p2053_p9), [#allocation3], 4294949760  ;;  %s1931_s12 = sshll.u32 %s2347_s22, 4  ;;  %vm285_vm0 = vcmask 64512   ;;  %v283_v0 = vld [vmem:[#allocation2] sm:$0xff]  ;;  %v429_v10 = vld [vmem:[#allocation2 + $0x78] sm:$0xff] }
  0x17   : > { %p253_p13 = scmp.lt.s32.totalorder %s1931_s12, 31  ;;  %349 = vmatpush.msra.mxu0 %v283_v0  ;;  %1989 = vmatpush.msra.mxu2 %v283_v0  ;;  %v430_v9 = vld [vmem:[#allocation2 + $0x80] sm:$0xff]  ;;  %v428_v11 = vld [vmem:[#allocation2 + $0x70] sm:$0xff]  ;;  %v427_v13 = vld [vmem:[#allocation2 + $0x68] sm:$0xff]  ;;  %s2293_s30 = smov 64   ;;  %vm980_vm1 = vcmask 523264  }
  0x18   : > { %1990 = vmatpush.msra.mxu3 %v283_v0  ;;  %432 = vmatpush.msra.mxu1 %v430_v9  ;;  %v426_v16 = vld [vmem:[#allocation2 + $0x60] sm:$0xff]  ;;  %v425_v17 = vld [vmem:[#allocation2 + $0x58] sm:$0xff]  ;;  %v424_v18 = vld [vmem:[#allocation2 + $0x50] sm:$0xff]  ;;  %s2242_s10 = scalar_lea.hbm %s2922_s5, 256 }
  0x19   : > { %s2930_s12 = smov (!%p253_p13, %s1931_s12), 31  ;;  %1991 = vmatpush.msrb.mxu2 %v430_v9  ;;  %v423_v20 = vld [vmem:[#allocation2 + $0x48] sm:$0xff]  ;;  %v422_v22 = vld [vmem:[#allocation2 + $0x40] sm:$0xff]  ;;  %v421_v23 = vld [vmem:[#allocation2 + $0x38] sm:$0xff] }
  0x1a   : > { %s1932_s13 = sshll.u32 %s2930_s12, 3  ;;  %1992 = vmatpush.msrb.mxu3 %v430_v9  ;;  %433 = vmatpush.msra.mxu1 %v429_v10  ;;  %v420_v24 = vld [vmem:[#allocation2 + $0x30] sm:$0xff]  ;;  %v419_v26 = vld [vmem:[#allocation2 + $0x28] sm:$0xff]  ;;  %v418_v28 = vld [vmem:[#allocation2 + $0x20] sm:$0xff] }
  0x1b   : > { %s2393_s16 = scalar_lea.vmem %s2917_s0, %s1932_s13  ;;  %1993 = vmatpush.msrb.mxu2 %v429_v10  ;;  %v417_v30 = vld [vmem:[#allocation2 + $0x18] sm:$0xff]  ;;  %v416_v31 = vld [vmem:[#allocation2 + $0x10] sm:$0xff]  ;;  %v415_v32 = vld [vmem:[#allocation2 + $0x8] sm:$0xff]  ;;  %s2672_s8 = scalar_lea.vmem %s2918_s1, %s1932_s13 }
  0x1c   : > { %v267_v1 = vld [vmem:[%s2393_s16] sm:$0xff]  ;;  %v268_v2 = vld [vmem:[%s2393_s16 + $0x8] sm:$0xff]  ;;  %v269_v3 = vld [vmem:[%s2393_s16 + $0x10] sm:$0xff]  ;;  %1994 = vmatpush.msrb.mxu3 %v429_v10  ;;  %434 = vmatpush.msra.mxu1 %v428_v11  ;;  %s249_s13 = sand.u32 1, %s2280_s19  }
  0x1d   : > { %1935 = vmatmul.msk.f32.vlgmr.msra.gmra.mxu0 %vm285_vm0, %v267_v1  ;;  %v270_v4 = vld [vmem:[%s2393_s16 + $0x18] sm:$0xff]  ;;  %v271_v5 = vld [vmem:[%s2393_s16 + $0x20] sm:$0xff]  ;;  %v272_v6 = vld [vmem:[%s2393_s16 + $0x28] sm:$0xff]  ;;  %1995 = vmatpush.msrb.mxu2 %v428_v11  ;;  %s1930_s14 = sshll.u32 %s249_s13, 7 }
  0x1e   : > { %v277_v7 = vld [vmem:[%s2393_s16 + $0x50] sm:$0xff]  ;;  %v279_v8 = vld [vmem:[%s2393_s16 + $0x60] sm:$0xff]  ;;  %v278_v14 = vld [vmem:[%s2393_s16 + $0x58] sm:$0xff]  ;;  %1996 = vmatpush.msrb.mxu3 %v428_v11  ;;  %435 = vmatpush.msra.mxu1 %v427_v13  ;;  %s2839_s15 = scalar_lea.vmem [#allocation5], %s1930_s14 }
  0x1f   : > { %1945 = vmatmul.msk.f32.vlgmr.msra.gmra.mxu2 %vm285_vm0, %v277_v7  ;;  %1947 = vmatmul.msk.f32.vlgmr.msra.gmra.mxu3 %vm285_vm0, %v279_v8  ;;  %v273_v12 = vld [vmem:[%s2393_s16 + $0x30] sm:$0xff]  ;;  %v280_v15 = vld [vmem:[%s2393_s16 + $0x68] sm:$0xff]  ;;  %v274_v19 = vld [vmem:[%s2393_s16 + $0x38] sm:$0xff] }
  0x20   : > { %436 = vmatpush.msra.mxu1 %v426_v16  ;;  %1997 = vmatpush.msrb.mxu2 %v427_v13  ;;  %v281_v21 = vld [vmem:[%s2393_s16 + $0x70] sm:$0xff]  ;;  %v275_v25 = vld [vmem:[%s2393_s16 + $0x40] sm:$0xff]  ;;  %v282_v27 = vld [vmem:[%s2393_s16 + $0x78] sm:$0xff] }
  0x21   : > { %1998 = vmatpush.msrb.mxu3 %v427_v13  ;;  %v276_v29 = vld [vmem:[%s2393_s16 + $0x48] sm:$0xff]  ;;  %v2430_v33 = vld [vmem:[%s2921_s4] sm:$0xff]  ;;  %v527_v59 = vld [vmem:[#allocation2 + $0xf8] sm:$0xff]  ;;  %s1988_s16 = sshll.u32 %s2347_s22, 7  ;;  %s1835_s22 = sshll.u32 %s2839_s15, 4  ;;  %s1836_s22 = int_to_ptr.vmem [resolvable:$true] %s1835_s22 }
  0x22   : > { %437 = vmatpush.msra.mxu1 %v425_v17  ;;  %1999 = vmatpush.msrb.mxu2 %v426_v16  ;;  %v2433_v34 = vperm.slane %v2430_v33, 0  ;;  %v528_v58 = vld [vmem:[#allocation2 + $0x100] sm:$0xff]  ;;  %v526_v61 = vld [vmem:[#allocation2 + $0xf0] sm:$0xff]  ;;  %v525_v1 = vld [vmem:[#allocation2 + $0xe8] sm:$0xff]  ;;  %s1834_s25 = scalar_lea.hbm %s2922_s5, %s1988_s16 }
  0x23   : > { %2000 = vmatpush.msrb.mxu3 %v426_v16  ;;  %v523_v7 = vld [vmem:[#allocation2 + $0xd8] sm:$0xff]  ;;  %v522_v8 = vld [vmem:[#allocation2 + $0xd0] sm:$0xff]  ;;  %s1837_s26 = sshll.u32 %s1834_s25, 4  ;;  %s1838_s26 = int_to_ptr.hbm [resolvable:$true] %s1837_s26 }
  0x24   : > { %438 = vmatpush.msra.mxu1 %v424_v18  ;;  %2001 = vmatpush.msrb.mxu2 %v425_v17  ;;  %v519_v16 = vld [vmem:[#allocation2 + $0xb8] sm:$0xff]  ;;  %s2236_s6 = sshra.s32 %s1838_s26, 4  ;;  %s2237_s6 = int_to_ptr.hbm [resolvable:$true] %s2236_s6 }
  0x25   : > { %1936 = vmatmul.msk.f32.gmra.mxu0 %vm285_vm0, %v268_v2  ;;  %2002 = vmatpush.msrb.mxu3 %v425_v17  ;;  %s2238_s7 = scalar_lea.hbm %s2237_s6, 128  ;;  %p2243_p3 = scmp.lt.s32.totalorder %s2237_s6, %s2922_s5 }
  0x26   : > { %439 = vmatpush.msra.mxu1 %v423_v20  ;;  %2003 = vmatpush.msrb.mxu2 %v424_v18  ;;  %p2239_p0 = scmp.ne.s32.totalorder %s2237_s6, %s2238_s7  ;;  %p2244_p4 = scmp.lt.s32.totalorder %s2242_s10, %s2238_s7 }
  0x27   : > { %1946 = vmatmul.msk.f32.gmra.mxu2 %vm285_vm0, %v278_v14  ;;  %1948 = vmatmul.msk.f32.gmra.mxu3 %vm285_vm0, %v280_v15  ;;  %v520_v14 = vld [vmem:[#allocation2 + $0xc0] sm:$0xff] }
  0x28   : > { %440 = vmatpush.msra.mxu1 %v422_v22  ;;  %2004 = vmatpush.msrb.mxu3 %v424_v18  ;;  %v518_v18 = vld [vmem:[#allocation2 + $0xb0] sm:$0xff]  ;;  %p2240_p1 = pnand %p2239_p0, %p2364_p5  ;;  %p2245_p7 = por %p2244_p4, %p2243_p3 }
  0x29   : > { %2005 = vmatpush.msrb.mxu2 %v423_v20 }
  0x2a   : > { %441 = vmatpush.msra.mxu1 %v421_v23  ;;  %2006 = vmatpush.msrb.mxu3 %v423_v20  ;;  %p2241_p2 = pneg %p2240_p1 }
  0x2b   : > { %2007 = vmatpush.msrb.mxu2 %v422_v22 }
  0x2c   : > { %442 = vmatpush.msra.mxu1 %v420_v24  ;;  %2008 = vmatpush.msrb.mxu3 %v422_v22  ;;  %v517_v22 = vld [vmem:[#allocation2 + $0xa8] sm:$0xff]  ;;  %p2246_p8 = pnand %p2245_p7, %p2241_p2 }
  0x2d   : > { %1937 = vmatmul.msk.f32.gmra.mxu0 %vm285_vm0, %v269_v3  ;;  %2009 = vmatpush.msrb.mxu2 %v421_v23 }
  0x2e   : > { %443 = vmatpush.msra.mxu1 %v419_v26  ;;  %2010 = vmatpush.msrb.mxu3 %v421_v23 }
  0x2f   : > { %1949 = vmatmul.msk.f32.gmra.mxu3 %vm285_vm0, %v281_v21  ;;  %2011 = vmatpush.msrb.mxu2 %v420_v24 }
  0x30   : > { %444 = vmatpush.msra.mxu1 %v418_v28  ;;  %2012 = vmatpush.msrb.mxu3 %v420_v24  ;;  %v516_v24 = vld [vmem:[#allocation2 + $0xa0] sm:$0xff] }
  0x31   : > { %2013 = vmatpush.msrb.mxu2 %v419_v26 }
  0x32   : > { %2014 = vmatpush.msrb.mxu3 %v419_v26  ;;  %445 = vmatpush.msra.mxu1 %v417_v30 }
  0x33   : > { %2015 = vmatpush.msrb.mxu2 %v418_v28 }
  0x34   : > { %2016 = vmatpush.msrb.mxu3 %v418_v28  ;;  %446 = vmatpush.msra.mxu1 %v416_v31 }
  0x35   : > { %1938 = vmatmul.msk.f32.gmra.mxu0 %vm285_vm0, %v270_v4  ;;  %2017 = vmatpush.msrb.mxu2 %v417_v30  ;;  %v524_v4 = vld [vmem:[#allocation2 + $0xe0] sm:$0xff] }
  0x36   : > { %2018 = vmatpush.msrb.mxu3 %v417_v30  ;;  %447 = vmatpush.msra.mxu1 %v415_v32 }
  0x37   : > { %1950 = vmatmul.msk.f32.gmra.mxu3 %vm285_vm0, %v282_v27  ;;  %2019 = vmatpush.msrb.mxu2 %v416_v31 }
  0x38   : > { %2020 = vmatpush.msrb.mxu3 %v416_v31 }
  0x39   : > { %2021 = vmatpush.msrb.mxu2 %v415_v32 }
  0x3a   : > { %2022 = vmatpush.msrb.mxu3 %v415_v32  ;;  %v515_v32 = vld [vmem:[#allocation2 + $0x98] sm:$0xff] }
  0x3b   : > { %533 = vmatpush.msra.mxu2 %v528_v58 }
  0x3d   : > { %1939 = vmatmul.msk.f32.gmra.mxu0 %vm285_vm0, %v271_v5  ;;  %534 = vmatpush.msra.mxu2 %v527_v59 }
  0x3f   : > { %535 = vmatpush.msra.mxu2 %v526_v61 }
  0x41   : > { %536 = vmatpush.msra.mxu2 %v525_v1  ;;  %v645_v1 = vld [vmem:[#allocation2 + $0x178] sm:$0xff] }
  0x43   : > { %537 = vmatpush.msra.mxu2 %v524_v4 }
  0x45   : > { %1940 = vmatmul.msk.f32.gmra.mxu0 %vm285_vm0, %v272_v6  ;;  %538 = vmatpush.msra.mxu2 %v523_v7  ;;  %v643_v7 = vld [vmem:[#allocation2 + $0x168] sm:$0xff] }
  0x47   : > { %539 = vmatpush.msra.mxu2 %v522_v8  ;;  %v642_v8 = vld [vmem:[#allocation2 + $0x160] sm:$0xff] }
  0x4d   : > { %1941 = vmatmul.msk.f32.gmra.mxu0 %vm285_vm0, %v273_v12  ;;  %v521_v12 = vld [vmem:[#allocation2 + $0xc8] sm:$0xff] }
  0x4e   : > { %540 = vmatpush.msra.mxu2 %v521_v12 }
  0x50   : > { %541 = vmatpush.msra.mxu2 %v520_v14 }
  0x52   : > { %542 = vmatpush.msra.mxu2 %v519_v16  ;;  %v639_v16 = vld [vmem:[#allocation2 + $0x148] sm:$0xff] }
  0x54   : > { %543 = vmatpush.msra.mxu2 %v518_v18 }
  0x55   : > { %1942 = vmatmul.msk.f32.gmra.mxu0 %vm285_vm0, %v274_v19 }
  0x56   : > { %544 = vmatpush.msra.mxu2 %v517_v22  ;;  %v635_v22 = vld [vmem:[#allocation2 + $0x128] sm:$0xff] }
  0x58   : > { %545 = vmatpush.msra.mxu2 %v516_v24 }
  0x5a   : > { %546 = vmatpush.msra.mxu2 %v515_v32 }
  0x5d   : > { %1943 = vmatmul.msk.f32.gmra.mxu0 %vm285_vm0, %v275_v25 }
  0x65   : > { %1944 = vmatmul.msk.f32.gmra.mxu0 %vm285_vm0, %v276_v29 }
  0x9a   : > { %v351_v35 = vpop.f32.mrf.mxu0 }
  0x9b   : > { %v352_v36 = vadd.f32 %v351_v35, %v2433_v34  ;;  %v514_v35 = vld [vmem:[#allocation2 + $0x90] sm:$0xff] }
  0x9c   : > { %547 = vmatpush.msra.mxu2 %v514_v35 }
  0x9d   : > { %v399_v37 = vmax.f32 %v352_v36, 0.0  ;;  %v513_v36 = vld [vmem:[#allocation2 + $0x88] sm:$0xff] }
  0x9e   : > { %548 = vmatpush.msra.mxu2 %v513_v36 }
  0x9f   : > { %448 = vmatmul.f32.vlgmr.msra.gmra.mxu1 %v399_v37  ;;  %v2452_v37 = vperm.slane %v2430_v33, 1 }
  0xa2   : > { %v354_v38 = vpop.f32.mrf.mxu0  ;;  %v381_v53 = vpop.f32.mrf.mxu2 }
  0xa3   : > { %v355_v39 = vadd.f32 %v354_v38, %v2433_v34  ;;  %v387_v57 = vpop.f32.mrf.mxu3  ;;  %v382_v26 = vadd.f32 %v381_v53, %v2433_v34 }
  0xa4   : > { %v388_v5 = vadd.f32 %v387_v57, %v2433_v34 }
  0xa5   : > { %v400_v40 = vmax.f32 %v355_v39, 0.0  ;;  %v409_v28 = vmax.f32 %v382_v26, 0.0  ;;  %v633_v26 = vld [vmem:[#allocation2 + $0x118] sm:$0xff] }
  0xa6   : > { %v411_v10 = vmax.f32 %v388_v5, 0.0 }
  0xa7   : > { %451 = vmatmul.f32.gmra.mxu1 %v400_v40 }
  0xaa   : > { %v357_v41 = vpop.f32.mrf.mxu0  ;;  %v384_v60 = vpop.f32.mrf.mxu2 }
  0xab   : > { %v358_v42 = vadd.f32 %v357_v41, %v2433_v34  ;;  %v385_v63 = vadd.f32 %v384_v60, %v2433_v34  ;;  %v390_v6 = vpop.f32.mrf.mxu3 }
  0xac   : > { %v391_v15 = vadd.f32 %v390_v6, %v2433_v34 }
  0xad   : > { %v401_v43 = vmax.f32 %v358_v42, 0.0  ;;  %v410_v2 = vmax.f32 %v385_v63, 0.0 }
  0xae   : > { %v412_v20 = vmax.f32 %v391_v15, 0.0  ;;  %v640_v15 = vld [vmem:[#allocation2 + $0x150] sm:$0xff] }
  0xaf   : > { %454 = vmatmul.f32.gmra.mxu1 %v401_v43  ;;  %481 = vmatmul.f32.vlgmr.msrb.gmra.mxu3 %v410_v2  ;;  %v644_v2 = vld [vmem:[#allocation2 + $0x170] sm:$0xff] }
  0xb2   : > { %v360_v44 = vpop.f32.mrf.mxu0 }
  0xb3   : > { %v361_v45 = vadd.f32 %v360_v44, %v2433_v34  ;;  %v393_v17 = vpop.f32.mrf.mxu3 }
  0xb4   : > { %v394_v25 = vadd.f32 %v393_v17, %v2433_v34  ;;  %v638_v17 = vld [vmem:[#allocation2 + $0x140] sm:$0xff] }
  0xb5   : > { %v402_v46 = vmax.f32 %v361_v45, 0.0 }
  0xb6   : > { %v413_v27 = vmax.f32 %v394_v25, 0.0  ;;  %v634_v25 = vld [vmem:[#allocation2 + $0x120] sm:$0xff] }
  0xb7   : > { %457 = vmatmul.f32.gmra.mxu1 %v402_v46  ;;  %484 = vmatmul.f32.gmra.mxu3 %v411_v10 }
  0xba   : > { %v363_v47 = vpop.f32.mrf.mxu0 }
  0xbb   : > { %v364_v48 = vadd.f32 %v363_v47, %v2433_v34  ;;  %v396_v29 = vpop.f32.mrf.mxu3 }
  0xbc   : > { %v397_v30 = vadd.f32 %v396_v29, %v2433_v34  ;;  %v631_v29 = vld [vmem:[#allocation2 + $0x108] sm:$0xff] }
  0xbd   : > { %v403_v49 = vmax.f32 %v364_v48, 0.0 }
  0xbe   : > { %v414_v31 = vmax.f32 %v397_v30, 0.0 }
  0xbf   : > { %460 = vmatmul.f32.gmra.mxu1 %v403_v49  ;;  %487 = vmatmul.f32.gmra.mxu3 %v412_v20 }
  0xc2   : > { %v366_v50 = vpop.f32.mrf.mxu0 }
  0xc3   : > { %v367_v51 = vadd.f32 %v366_v50, %v2433_v34 }
  0xc5   : > { %v404_v52 = vmax.f32 %v367_v51, 0.0 }
  0xc7   : > { %463 = vmatmul.f32.gmra.mxu1 %v404_v52  ;;  %490 = vmatmul.f32.gmra.mxu3 %v413_v27 }
  0xca   : > { %v369_v54 = vpop.f32.mrf.mxu0 }
  0xcb   : > { %v370_v55 = vadd.f32 %v369_v54, %v2433_v34 }
  0xcd   : > { %v405_v56 = vmax.f32 %v370_v55, 0.0 }
  0xcf   : > { %466 = vmatmul.f32.gmra.mxu1 %v405_v56  ;;  %493 = vmatmul.f32.gmra.mxu3 %v414_v31 }
  0xd2   : > { %v372_v62 = vpop.f32.mrf.mxu0 }
  0xd3   : > { %v373_v0 = vadd.f32 %v372_v62, %v2433_v34 }
  0xd5   : > { %v406_v3 = vmax.f32 %v373_v0, 0.0  ;;  %v646_v0 = vld [vmem:[#allocation2 + $0x180] sm:$0xff] }
  0xd6   : > { %648 = vmatpush.msra.mxu3 %v646_v0 }
  0xd7   : > { %469 = vmatmul.f32.vlgmr.msrb.gmra.mxu2 %v406_v3 }
  0xd8   : > { %649 = vmatpush.msra.mxu3 %v645_v1 }
  0xda   : > { %v375_v9 = vpop.f32.mrf.mxu0  ;;  %650 = vmatpush.msra.mxu3 %v644_v2 }
  0xdb   : > { %v376_v11 = vadd.f32 %v375_v9, %v2433_v34  ;;  %v641_v9 = vld [vmem:[#allocation2 + $0x158] sm:$0xff] }
  0xdc   : > { %651 = vmatpush.msra.mxu3 %v643_v7 }
  0xdd   : > { %v407_v13 = vmax.f32 %v376_v11, 0.0 }
  0xde   : > { %652 = vmatpush.msra.mxu3 %v642_v8 }
  0xdf   : > { %472 = vmatmul.f32.gmra.mxu2 %v407_v13 }
  0xe0   : > { %653 = vmatpush.msra.mxu3 %v641_v9 }
  0xe2   : > { %v378_v19 = vpop.f32.mrf.mxu0  ;;  %654 = vmatpush.msra.mxu3 %v640_v15 }
  0xe3   : > { %v379_v21 = vadd.f32 %v378_v19, %v2433_v34  ;;  %v637_v19 = vld [vmem:[#allocation2 + $0x138] sm:$0xff] }
  0xe4   : > { %655 = vmatpush.msra.mxu3 %v639_v16 }
  0xe5   : > { %v408_v23 = vmax.f32 %v379_v21, 0.0  ;;  %v636_v21 = vld [vmem:[#allocation2 + $0x130] sm:$0xff] }
  0xe6   : > { %656 = vmatpush.msra.mxu3 %v638_v17 }
  0xe7   : > { %475 = vmatmul.f32.gmra.mxu2 %v408_v23 }
  0xe8   : > { %657 = vmatpush.msra.mxu3 %v637_v19 }
  0xea   : > { %658 = vmatpush.msra.mxu3 %v636_v21  ;;  %v744_v21 = vld [vmem:[#allocation2 + $0x200] sm:$0xff] }
  0xeb   : > { %746 = vmatpush.msrb.mxu0 %v744_v21 }
  0xec   : > { %659 = vmatpush.msra.mxu3 %v635_v22  ;;  %v743_v22 = vld [vmem:[#allocation2 + $0x1f8] sm:$0xff] }
  0xed   : > { %747 = vmatpush.msrb.mxu0 %v743_v22 }
  0xee   : > { %660 = vmatpush.msra.mxu3 %v634_v25 }
  0xef   : > { %478 = vmatmul.f32.gmra.mxu2 %v409_v28  ;;  %v632_v28 = vld [vmem:[#allocation2 + $0x110] sm:$0xff] }
  0xf0   : > { %661 = vmatpush.msra.mxu3 %v633_v26 }
  0xf2   : > { %662 = vmatpush.msra.mxu3 %v632_v28 }
  0xf4   : > { %663 = vmatpush.msra.mxu3 %v631_v29  ;;  %v742_v29 = vld [vmem:[#allocation2 + $0x1f0] sm:$0xff] }
  0xf5   : > { %748 = vmatpush.msrb.mxu0 %v742_v29 }
 0x11c   : > { %v449_v38 = vpop.f32.mrf.mxu1 }
 0x11d   : > { %v2455_v39 = vadd.f32 %v449_v38, %v2452_v37 }
 0x11f   : > { %v497_v40 = vmax.f32 %v2455_v39, 0.0  ;;  %v1218_v39 = vld [vmem:[#allocation2 + $0x318] sm:$0xff] }
 0x121   : > { %549 = vmatmul.f32.vlgmr.msra.gmra.mxu2 %v497_v40 }
 0x124   : > { %v452_v34 = vpop.f32.mrf.mxu1 }
 0x125   : > { %v2461_v41 = vadd.f32 %v452_v34, %v2452_v37 }
 0x127   : > { %v498_v42 = vmax.f32 %v2461_v41, 0.0 }
 0x129   : > { %552 = vmatmul.f32.gmra.mxu2 %v498_v42 }
 0x12c   : > { %v455_v43 = vpop.f32.mrf.mxu1 }
 0x12d   : > { %v2467_v44 = vadd.f32 %v455_v43, %v2452_v37  ;;  %v2553_v43 = vld [vmem:[%s2919_s2] ss:$0 sm:$0xff] }
 0x12f   : > { %v499_v45 = vmax.f32 %v2467_v44, 0.0 }
 0x131   : > { %555 = vmatmul.f32.gmra.mxu2 %v499_v45 }
 0x132   : > { %v482_v5 = vpop.f32.mrf.mxu3 }
 0x133   : > { %v2521_v14 = vadd.f32 %v482_v5, %v2452_v37 }
 0x134   : > { %v458_v46 = vpop.f32.mrf.mxu1 }
 0x135   : > { %v2473_v47 = vadd.f32 %v458_v46, %v2452_v37  ;;  %v508_v18 = vmax.f32 %v2521_v14, 0.0  ;;  %v2556_v46 = vperm.slane %v2430_v33, 2 }
 0x137   : > { %v500_v48 = vmax.f32 %v2473_v47, 0.0 }
 0x139   : > { %558 = vmatmul.f32.gmra.mxu2 %v500_v48 }
 0x13a   : > { %v485_v13 = vpop.f32.mrf.mxu3 }
 0x13b   : > { %v2527_v20 = vadd.f32 %v485_v13, %v2452_v37 }
 0x13c   : > { %v461_v49 = vpop.f32.mrf.mxu1 }
 0x13d   : > { %v2479_v50 = vadd.f32 %v461_v49, %v2452_v37  ;;  %v509_v24 = vmax.f32 %v2527_v20, 0.0  ;;  %v1321_v20 = vld [vmem:[#allocation2 + $0x3c0] sm:$0xff] }
 0x13f   : > { %v501_v51 = vmax.f32 %v2479_v50, 0.0 }
 0x141   : > { %561 = vmatmul.f32.gmra.mxu2 %v501_v51 }
 0x142   : > { %v488_v23 = vpop.f32.mrf.mxu3 }
 0x143   : > { %v2533_v27 = vadd.f32 %v488_v23, %v2452_v37 }
 0x144   : > { %v464_v52 = vpop.f32.mrf.mxu1 }
 0x145   : > { %v2485_v53 = vadd.f32 %v464_v52, %v2452_v37  ;;  %v510_v31 = vmax.f32 %v2533_v27, 0.0 }
 0x147   : > { %v502_v54 = vmax.f32 %v2485_v53, 0.0 }
 0x149   : > { %564 = vmatmul.f32.gmra.mxu2 %v502_v54 }
 0x14a   : > { %v491_v30 = vpop.f32.mrf.mxu3 }
 0x14b   : > { %v2539_v32 = vadd.f32 %v491_v30, %v2452_v37  ;;  %v741_v30 = vld [vmem:[#allocation2 + $0x1e8] sm:$0xff] }
 0x14c   : > { %v467_v55 = vpop.f32.mrf.mxu1  ;;  %749 = vmatpush.msrb.mxu0 %v741_v30 }
 0x14d   : > { %v2491_v56 = vadd.f32 %v467_v55, %v2452_v37  ;;  %v511_v35 = vmax.f32 %v2539_v32, 0.0  ;;  %v1319_v32 = vld [vmem:[#allocation2 + $0x3b0] sm:$0xff] }
 0x14f   : > { %v503_v57 = vmax.f32 %v2491_v56, 0.0  ;;  %v1212_v56 = vld [vmem:[#allocation2 + $0x2e8] sm:$0xff] }
 0x151   : > { %567 = vmatmul.f32.gmra.mxu2 %v503_v57 }
 0x152   : > { %v494_v36 = vpop.f32.mrf.mxu3 }
 0x153   : > { %v2545_v38 = vadd.f32 %v494_v36, %v2452_v37 }
 0x155   : > { %v512_v34 = vmax.f32 %v2545_v38, 0.0 }
 0x15a   : > { %v470_v58 = vpop.f32.mrf.mxu2 }
 0x15b   : > { %v2497_v59 = vadd.f32 %v470_v58, %v2452_v37 }
 0x15d   : > { %v504_v60 = vmax.f32 %v2497_v59, 0.0  ;;  %v1211_v59 = vld [vmem:[#allocation2 + $0x2e0] sm:$0xff] }
 0x15f   : > { %570 = vmatmul.f32.gmra.mxu2 %v504_v60 }
 0x162   : > { %v473_v61 = vpop.f32.mrf.mxu2 }
 0x163   : > { %v2503_v62 = vadd.f32 %v473_v61, %v2452_v37 }
 0x165   : > { %v505_v63 = vmax.f32 %v2503_v62, 0.0  ;;  %v1210_v62 = vld [vmem:[#allocation2 + $0x2d8] sm:$0xff] }
 0x167   : > { %573 = vmatmul.f32.gmra.mxu2 %v505_v63 }
 0x16a   : > { %v476_v3 = vpop.f32.mrf.mxu2 }
 0x16b   : > { %v2509_v4 = vadd.f32 %v476_v3, %v2452_v37 }
 0x16d   : > { %v506_v6 = vmax.f32 %v2509_v4, 0.0  ;;  %v1209_v4 = vld [vmem:[#allocation2 + $0x2d0] sm:$0xff] }
 0x16f   : > { %576 = vmatmul.f32.gmra.mxu2 %v506_v6 }
 0x172   : > { %v479_v10 = vpop.f32.mrf.mxu2 }
 0x173   : > { %v2515_v11 = vadd.f32 %v479_v10, %v2452_v37 }
 0x175   : > { %v507_v12 = vmax.f32 %v2515_v11, 0.0  ;;  %v1208_v11 = vld [vmem:[#allocation2 + $0x2c8] sm:$0xff] }
 0x177   : > { %579 = vmatmul.f32.gmra.mxu2 %v507_v12 }
 0x17f   : > { %582 = vmatmul.f32.gmra.mxu2 %v508_v18 }
 0x187   : > { %585 = vmatmul.f32.gmra.mxu2 %v509_v24 }
 0x18f   : > { %588 = vmatmul.f32.gmra.mxu2 %v510_v31 }
 0x197   : > { %591 = vmatmul.f32.gmra.mxu2 %v511_v35 }
 0x19f   : > { %594 = vmatmul.f32.gmra.mxu2 %v512_v34 }
 0x1a4   : > { %v550_v49 = vpop.f32.mrf.mxu2 }
 0x1a5   : > { %v551_v52 = vadd.f32 %v2553_v43, %v550_v49 }
 0x1a7   : > { %v599_v55 = vadd.f32 %v2556_v46, %v551_v52 }
 0x1a9   : > { %v615_v37 = vmax.f32 %v599_v55, 0.0 }
 0x1ab   : > { %664 = vmatmul.f32.vlgmr.msra.gmra.mxu3 %v615_v37  ;;  %v740_v37 = vld [vmem:[#allocation2 + $0x1e0] sm:$0xff] }
 0x1ac   : > { %v553_v58 = vpop.f32.mrf.mxu2  ;;  %750 = vmatpush.msrb.mxu0 %v740_v37  ;;  %v731_v37 = vld [vmem:[#allocation2 + $0x198] sm:$0xff] }
 0x1ad   : > { %v554_v61 = vadd.f32 %v2553_v43, %v553_v58 }
 0x1af   : > { %v600_v0 = vadd.f32 %v2556_v46, %v554_v61 }
 0x1b1   : > { %v616_v1 = vmax.f32 %v600_v0, 0.0  ;;  %v739_v0 = vld [vmem:[#allocation2 + $0x1d8] sm:$0xff] }
 0x1b2   : > { %751 = vmatpush.msrb.mxu0 %v739_v0 }
 0x1b3   : > { %667 = vmatmul.f32.gmra.mxu3 %v616_v1  ;;  %v738_v1 = vld [vmem:[#allocation2 + $0x1d0] sm:$0xff] }
 0x1b4   : > { %v556_v2 = vpop.f32.mrf.mxu2  ;;  %752 = vmatpush.msrb.mxu0 %v738_v1 }
 0x1b5   : > { %v557_v3 = vadd.f32 %v2553_v43, %v556_v2 }
 0x1b7   : > { %v601_v5 = vadd.f32 %v2556_v46, %v557_v3 }
 0x1b9   : > { %v617_v7 = vmax.f32 %v601_v5, 0.0 }
 0x1bb   : > { %670 = vmatmul.f32.gmra.mxu3 %v617_v7 }
 0x1bc   : > { %v559_v8 = vpop.f32.mrf.mxu2 }
 0x1bd   : > { %v560_v9 = vadd.f32 %v2553_v43, %v559_v8  ;;  %v737_v8 = vld [vmem:[#allocation2 + $0x1c8] sm:$0xff] }
 0x1be   : > { %753 = vmatpush.msrb.mxu0 %v737_v8 }
 0x1bf   : > { %v602_v10 = vadd.f32 %v2556_v46, %v560_v9 }
 0x1c1   : > { %v618_v13 = vmax.f32 %v602_v10, 0.0 }
 0x1c3   : > { %673 = vmatmul.f32.gmra.mxu3 %v618_v13  ;;  %v736_v13 = vld [vmem:[#allocation2 + $0x1c0] sm:$0xff] }
 0x1c4   : > { %v562_v15 = vpop.f32.mrf.mxu2  ;;  %754 = vmatpush.msrb.mxu0 %v736_v13 }
 0x1c5   : > { %v563_v16 = vadd.f32 %v2553_v43, %v562_v15 }
 0x1c7   : > { %v603_v17 = vadd.f32 %v2556_v46, %v563_v16 }
 0x1c9   : > { %v619_v19 = vmax.f32 %v603_v17, 0.0  ;;  %v735_v17 = vld [vmem:[#allocation2 + $0x1b8] sm:$0xff] }
 0x1ca   : > { %755 = vmatpush.msrb.mxu0 %v735_v17 }
 0x1cb   : > { %676 = vmatmul.f32.gmra.mxu3 %v619_v19 }
 0x1cc   : > { %v565_v23 = vpop.f32.mrf.mxu2 }
 0x1cd   : > { %v566_v25 = vadd.f32 %v2553_v43, %v565_v23 }
 0x1cf   : > { %v604_v26 = vadd.f32 %v2556_v46, %v566_v25  ;;  %v734_v25 = vld [vmem:[#allocation2 + $0x1b0] sm:$0xff] }
 0x1d0   : > { %756 = vmatpush.msrb.mxu0 %v734_v25 }
 0x1d1   : > { %v620_v28 = vmax.f32 %v604_v26, 0.0  ;;  %v733_v26 = vld [vmem:[#allocation2 + $0x1a8] sm:$0xff] }
 0x1d2   : > { %757 = vmatpush.msrb.mxu0 %v733_v26 }
 0x1d3   : > { %679 = vmatmul.f32.gmra.mxu3 %v620_v28 }
 0x1d4   : > { %v568_v36 = vpop.f32.mrf.mxu2 }
 0x1d5   : > { %v569_v49 = vadd.f32 %v2553_v43, %v568_v36 }
 0x1d7   : > { %v605_v52 = vadd.f32 %v2556_v46, %v569_v49 }
 0x1d9   : > { %v621_v55 = vmax.f32 %v605_v52, 0.0 }
 0x1db   : > { %682 = vmatmul.f32.gmra.mxu3 %v621_v55  ;;  %v732_v55 = vld [vmem:[#allocation2 + $0x1a0] sm:$0xff] }
 0x1dc   : > { %758 = vmatpush.msrb.mxu0 %v732_v55 }
 0x1de   : > { %759 = vmatpush.msrb.mxu0 %v731_v37 }
 0x1e2   : > { %v571_v58 = vpop.f32.mrf.mxu2 }
 0x1e3   : > { %v572_v61 = vadd.f32 %v2553_v43, %v571_v58 }
 0x1e5   : > { %v606_v2 = vadd.f32 %v2556_v46, %v572_v61 }
 0x1e7   : > { %v622_v3 = vmax.f32 %v606_v2, 0.0  ;;  %v730_v2 = vld [vmem:[#allocation2 + $0x190] sm:$0xff] }
 0x1e8   : > { %760 = vmatpush.msrb.mxu0 %v730_v2 }
 0x1e9   : > { %685 = vmatmul.f32.gmra.mxu3 %v622_v3  ;;  %v729_v3 = vld [vmem:[#allocation2 + $0x188] sm:$0xff] }
 0x1ea   : > { %v574_v5 = vpop.f32.mrf.mxu2  ;;  %761 = vmatpush.msrb.mxu0 %v729_v3 }
 0x1eb   : > { %v575_v7 = vadd.f32 %v2553_v43, %v574_v5 }
 0x1ec   : > { %1323 = vmatpush.msra.mxu0 %v1321_v20 }
 0x1ed   : > { %v607_v9 = vadd.f32 %v2556_v46, %v575_v7 }
 0x1ef   : > { %v623_v10 = vmax.f32 %v607_v9, 0.0 }
 0x1f1   : > { %688 = vmatmul.f32.gmra.mxu3 %v623_v10 }
 0x1f2   : > { %v577_v15 = vpop.f32.mrf.mxu2 }
 0x1f3   : > { %v578_v16 = vadd.f32 %v2553_v43, %v577_v15 }
 0x1f5   : > { %v608_v19 = vadd.f32 %v2556_v46, %v578_v16 }
 0x1f7   : > { %v624_v21 = vmax.f32 %v608_v19, 0.0 }
 0x1f9   : > { %691 = vmatmul.f32.gmra.mxu3 %v624_v21 }
 0x1fa   : > { %v580_v22 = vpop.f32.mrf.mxu2 }
 0x1fb   : > { %v581_v23 = vadd.f32 %v2553_v43, %v580_v22 }
 0x1fd   : > { %v609_v28 = vadd.f32 %v2556_v46, %v581_v23  ;;  %v647_v23 = vperm.slane %v2430_v33, 3 }
 0x1ff   : > { %v625_v29 = vmax.f32 %v609_v28, 0.0 }
 0x201   : > { %694 = vmatmul.f32.gmra.mxu3 %v625_v29 }
 0x202   : > { %v583_v30 = vpop.f32.mrf.mxu2 }
 0x203   : > { %v584_v36 = vadd.f32 %v2553_v43, %v583_v30 }
 0x205   : > { %v610_v49 = vadd.f32 %v2556_v46, %v584_v36 }
 0x207   : > { %v626_v52 = vmax.f32 %v610_v49, 0.0 }
 0x209   : > { %697 = vmatmul.f32.gmra.mxu3 %v626_v52 }
 0x20a   : > { %v586_v58 = vpop.f32.mrf.mxu2 }
 0x20b   : > { %v587_v61 = vadd.f32 %v2553_v43, %v586_v58 }
 0x20d   : > { %v611_v0 = vadd.f32 %v2556_v46, %v587_v61 }
 0x20f   : > { %v627_v1 = vmax.f32 %v611_v0, 0.0 }
 0x211   : > { %700 = vmatmul.f32.gmra.mxu3 %v627_v1 }
 0x212   : > { %v589_v5 = vpop.f32.mrf.mxu2 }
 0x213   : > { %v590_v7 = vadd.f32 %v2553_v43, %v589_v5 }
 0x215   : > { %v612_v8 = vadd.f32 %v2556_v46, %v590_v7 }
 0x217   : > { %v628_v9 = vmax.f32 %v612_v8, 0.0 }
 0x219   : > { %703 = vmatmul.f32.gmra.mxu3 %v628_v9 }
 0x21a   : > { %v592_v10 = vpop.f32.mrf.mxu2 }
 0x21b   : > { %v593_v13 = vadd.f32 %v2553_v43, %v592_v10 }
 0x21d   : > { %v613_v15 = vadd.f32 %v2556_v46, %v593_v13 }
 0x21f   : > { %v629_v16 = vmax.f32 %v613_v15, 0.0 }
 0x221   : > { %706 = vmatmul.f32.gmra.mxu3 %v629_v16 }
 0x222   : > { %v595_v17 = vpop.f32.mrf.mxu2 }
 0x223   : > { %v596_v19 = vadd.f32 %v2553_v43, %v595_v17 }
 0x225   : > { %v614_v21 = vadd.f32 %v2556_v46, %v596_v19 }
 0x227   : > { %v630_v22 = vmax.f32 %v614_v21, 0.0 }
 0x229   : > { %709 = vmatmul.f32.gmra.mxu3 %v630_v22 }
 0x22e   : > { %v665_v25 = vpop.f32.mrf.mxu3 }
 0x22f   : > { %v666_v26 = vadd.f32 %v665_v25, %v647_v23 }
 0x231   : > { %v713_v28 = vmax.f32 %v666_v26, 0.0 }
 0x233   : > { %762 = vmatmul.f32.vlgmr.msrb.gmra.mxu0 %v713_v28 }
 0x236   : > { %v668_v29 = vpop.f32.mrf.mxu3 }
 0x237   : > { %v669_v30 = vadd.f32 %v668_v29, %v647_v23 }
 0x239   : > { %v714_v36 = vmax.f32 %v669_v30, 0.0 }
 0x23b   : > { %765 = vmatmul.f32.gmra.mxu0 %v714_v36 }
 0x23e   : > { %v671_v49 = vpop.f32.mrf.mxu3 }
 0x23f   : > { %v672_v52 = vadd.f32 %v671_v49, %v647_v23 }
 0x241   : > { %v715_v55 = vmax.f32 %v672_v52, 0.0 }
 0x243   : > { %768 = vmatmul.f32.gmra.mxu0 %v715_v55 }
 0x246   : > { %v674_v37 = vpop.f32.mrf.mxu3 }
 0x247   : > { %v675_v43 = vadd.f32 %v674_v37, %v647_v23 }
 0x249   : > { %v716_v58 = vmax.f32 %v675_v43, 0.0 }
 0x24b   : > { %771 = vmatmul.f32.gmra.mxu0 %v716_v58 }
 0x24e   : > { %v677_v46 = vpop.f32.mrf.mxu3 }
 0x24f   : > { %v678_v61 = vadd.f32 %v677_v46, %v647_v23 }
 0x251   : > { %v717_v0 = vmax.f32 %v678_v61, 0.0 }
 0x253   : > { %774 = vmatmul.f32.gmra.mxu0 %v717_v0 }
 0x256   : > { %v680_v1 = vpop.f32.mrf.mxu3 }
 0x257   : > { %v681_v2 = vadd.f32 %v680_v1, %v647_v23 }
 0x259   : > { %v718_v3 = vmax.f32 %v681_v2, 0.0 }
 0x25b   : > { %777 = vmatmul.f32.gmra.mxu0 %v718_v3  ;;  %v2592_v3 = vperm.slane %v2430_v33, 4 }
 0x25e   : > { %v683_v5 = vpop.f32.mrf.mxu3 }
 0x25f   : > { %v684_v7 = vadd.f32 %v683_v5, %v647_v23 }
 0x261   : > { %v719_v8 = vmax.f32 %v684_v7, 0.0 }
 0x263   : > { %780 = vmatmul.f32.gmra.mxu0 %v719_v8 }
 0x26c   : > { %v686_v9 = vpop.f32.mrf.mxu3 }
 0x26d   : > { %v687_v10 = vadd.f32 %v686_v9, %v647_v23 }
 0x26f   : > { %v720_v13 = vmax.f32 %v687_v10, 0.0 }
 0x271   : > { %783 = vmatmul.f32.gmra.mxu0 %v720_v13 }
 0x274   : > { %v689_v15 = vpop.f32.mrf.mxu3 }
 0x275   : > { %v690_v16 = vadd.f32 %v689_v15, %v647_v23 }
 0x277   : > { %v721_v17 = vmax.f32 %v690_v16, 0.0 }
 0x279   : > { %786 = vmatmul.f32.gmra.mxu0 %v721_v17 }
 0x27c   : > { %v692_v19 = vpop.f32.mrf.mxu3 }
 0x27d   : > { %v693_v21 = vadd.f32 %v692_v19, %v647_v23 }
 0x27f   : > { %v722_v22 = vmax.f32 %v693_v21, 0.0 }
 0x281   : > { %789 = vmatmul.f32.gmra.mxu0 %v722_v22 }
 0x284   : > { %v695_v25 = vpop.f32.mrf.mxu3 }
 0x285   : > { %v696_v26 = vadd.f32 %v695_v25, %v647_v23 }
 0x287   : > { %v723_v28 = vmax.f32 %v696_v26, 0.0 }
 0x289   : > { %792 = vmatmul.f32.gmra.mxu0 %v723_v28 }
 0x28c   : > { %v698_v29 = vpop.f32.mrf.mxu3 }
 0x28d   : > { %v699_v30 = vadd.f32 %v698_v29, %v647_v23 }
 0x28f   : > { %v724_v36 = vmax.f32 %v699_v30, 0.0 }
 0x291   : > { %795 = vmatmul.f32.gmra.mxu0 %v724_v36 }
 0x294   : > { %v701_v49 = vpop.f32.mrf.mxu3 }
 0x295   : > { %v702_v52 = vadd.f32 %v701_v49, %v647_v23 }
 0x297   : > { %v725_v55 = vmax.f32 %v702_v52, 0.0 }
 0x299   : > { %798 = vmatmul.f32.gmra.mxu0 %v725_v55 }
 0x29c   : > { %v704_v37 = vpop.f32.mrf.mxu3 }
 0x29d   : > { %v705_v43 = vadd.f32 %v704_v37, %v647_v23 }
 0x29f   : > { %v726_v58 = vmax.f32 %v705_v43, 0.0 }
 0x2a1   : > { %801 = vmatmul.f32.gmra.mxu0 %v726_v58 }
 0x2a4   : > { %v707_v46 = vpop.f32.mrf.mxu3 }
 0x2a5   : > { %v708_v61 = vadd.f32 %v707_v46, %v647_v23 }
 0x2a7   : > { %v727_v0 = vmax.f32 %v708_v61, 0.0 }
 0x2a9   : > { %804 = vmatmul.f32.gmra.mxu0 %v727_v0 }
 0x2ac   : > { %v710_v1 = vpop.f32.mrf.mxu3 }
 0x2ad   : > { %v711_v2 = vadd.f32 %v710_v1, %v647_v23 }
 0x2af   : > { %v728_v5 = vmax.f32 %v711_v2, 0.0 }
 0x2b0   : > { %v763_v7 = vpop.f32.mrf.mxu0 }
 0x2b1   : > { %v2595_v8 = vadd.f32 %v763_v7, %v2592_v3  ;;  %807 = vmatmul.f32.gmra.mxu0 %v728_v5 }
 0x2b3   : > { %v827_v9 = vmul.f32 0.5, %v2595_v8 }
 0x2b5   : > { %v843_v10 = vmul.f32 1.442695, %v827_v9 }
 0x2b7   : > { %2095 = vpow2.f32 %v843_v10 }
 0x2b8   : > { %v766_v13 = vpop.f32.mrf.mxu0 }
 0x2b9   : > { %v2599_v15 = vadd.f32 %v766_v13, %v2592_v3  ;;  %v978_v13 = vld [vmem:[#allocation2 + $0x240] sm:$0xff] }
 0x2ba   : > { %1037 = vmatpush.msrb.mxu1 %v978_v13 }
 0x2bb   : > { %v828_v16 = vmul.f32 0.5, %v2599_v15 }
 0x2bd   : > { %v2096_v23 = vpop.eup %2095  ;;  %v845_v17 = vmul.f32 1.442695, %v828_v16 }
 0x2be   : > { %891 = vrot.lane.b32.xlu0 %v2096_v23, %s2293_s30  ;;  %v977_v23 = vld [vmem:[#allocation2 + $0x238] sm:$0xff] }
 0x2bf   : > { %2097 = vpow2.f32 %v845_v17  ;;  %1038 = vmatpush.msrb.mxu1 %v977_v23  ;;  %v972_v23 = vld [vmem:[#allocation2 + $0x210] sm:$0xff] }
 0x2c0   : > { %v769_v33 = vpop.f32.mrf.mxu0 }
 0x2c1   : > { %v2604_v19 = vadd.f32 %v769_v33, %v2592_v3 }
 0x2c3   : > { %v829_v21 = vmul.f32 0.5, %v2604_v19 }
 0x2c5   : > { %v2098_v22 = vpop.eup %2097  ;;  %v847_v25 = vmul.f32 1.442695, %v829_v21 }
 0x2c6   : > { %893 = vrot.lane.b32.xlu0 %v2098_v22, %s2293_s30 }
 0x2c7   : > { %2099 = vpow2.f32 %v847_v25  ;;  %v976_v25 = vld [vmem:[#allocation2 + $0x230] sm:$0xff] }
 0x2c8   : > { %v772_v26 = vpop.f32.mrf.mxu0  ;;  %1039 = vmatpush.msrb.mxu1 %v976_v25 }
 0x2c9   : > { %v2609_v28 = vadd.f32 %v772_v26, %v2592_v3 }
 0x2cb   : > { %v830_v29 = vmul.f32 0.5, %v2609_v28 }
 0x2cd   : > { %v2100_v30 = vpop.eup %2099  ;;  %v849_v36 = vmul.f32 1.442695, %v830_v29 }
 0x2ce   : > { %895 = vrot.lane.b32.xlu1 %v2100_v30, %s2293_s30 }
 0x2cf   : > { %2101 = vpow2.f32 %v849_v36 }
 0x2d0   : > { %v775_v49 = vpop.f32.mrf.mxu0 }
 0x2d1   : > { %v2614_v52 = vadd.f32 %v775_v49, %v2592_v3 }
 0x2d3   : > { %v831_v55 = vmul.f32 0.5, %v2614_v52 }
 0x2d5   : > { %v2102_v37 = vpop.eup %2101  ;;  %v851_v43 = vmul.f32 1.442695, %v831_v55  ;;  %v975_v55 = vld [vmem:[#allocation2 + $0x228] sm:$0xff] }
 0x2d6   : > { %897 = vrot.lane.b32.xlu1 %v2102_v37, %s2293_s30  ;;  %1040 = vmatpush.msrb.mxu1 %v975_v55 }
 0x2d7   : > { %2103 = vpow2.f32 %v851_v43 }
 0x2d8   : > { %v778_v58 = vpop.f32.mrf.mxu0 }
 0x2d9   : > { %v2619_v46 = vadd.f32 %v778_v58, %v2592_v3 }
 0x2db   : > { %v832_v61 = vmul.f32 0.5, %v2619_v46 }
 0x2dd   : > { %v2104_v0 = vpop.eup %2103  ;;  %v853_v1 = vmul.f32 1.442695, %v832_v61 }
 0x2de   : > { %899 = vrot.lane.b32.xlu2 %v2104_v0, %s2293_s30 }
 0x2df   : > { %2105 = vpow2.f32 %v853_v1  ;;  %v974_v1 = vld [vmem:[#allocation2 + $0x220] sm:$0xff] }
 0x2e0   : > { %v781_v2 = vpop.f32.mrf.mxu0  ;;  %1041 = vmatpush.msrb.mxu1 %v974_v1 }
 0x2e1   : > { %v2624_v5 = vadd.f32 %v781_v2, %v2592_v3 }
 0x2e3   : > { %v833_v7 = vmul.f32 0.5, %v2624_v5 }
 0x2e5   : > { %v2106_v9 = vpop.eup %2105  ;;  %v855_v10 = vmul.f32 1.442695, %v833_v7 }
 0x2e6   : > { %901 = vrot.lane.b32.xlu2 %v2106_v9, %s2293_s30 }
 0x2e7   : > { %2107 = vpow2.f32 %v855_v10 }
 0x2ed   : > { %v2108_v16 = vpop.eup %2107 }
 0x2ee   : > { %v784_v17 = vpop.f32.mrf.mxu0  ;;  %903 = vrot.lane.b32.xlu0 %v2108_v16, %s2293_s30  ;;  %v973_v16 = vld [vmem:[#allocation2 + $0x218] sm:$0xff] }
 0x2ef   : > { %v2630_v33 = vadd.f32 %v784_v17, %v2592_v3  ;;  %1042 = vmatpush.msrb.mxu1 %v973_v16 }
 0x2f1   : > { %v834_v21 = vmul.f32 0.5, %v2630_v33  ;;  %1043 = vmatpush.msrb.mxu1 %v972_v23 }
 0x2f3   : > { %v857_v22 = vmul.f32 1.442695, %v834_v21 }
 0x2f5   : > { %2109 = vpow2.f32 %v857_v22 }
 0x2f6   : > { %v787_v26 = vpop.f32.mrf.mxu0 }
 0x2f7   : > { %v2634_v29 = vadd.f32 %v787_v26, %v2592_v3 }
 0x2f9   : > { %v835_v30 = vmul.f32 0.5, %v2634_v29 }
 0x2fb   : > { %v2110_v36 = vpop.eup %2109  ;;  %v859_v49 = vmul.f32 1.442695, %v835_v30  ;;  %v971_v30 = vld [vmem:[#allocation2 + $0x208] sm:$0xff] }
 0x2fc   : > { %905 = vrot.lane.b32.xlu1 %v2110_v36, %s2293_s30  ;;  %1044 = vmatpush.msrb.mxu1 %v971_v30 }
 0x2fd   : > { %2111 = vpow2.f32 %v859_v49 }
 0x2fe   : > { %v790_v37 = vpop.f32.mrf.mxu0 }
 0x2ff   : > { %v2639_v43 = vadd.f32 %v790_v37, %v2592_v3 }
 0x301   : > { %v836_v58 = vmul.f32 0.5, %v2639_v43 }
 0x303   : > { %v2112_v61 = vpop.eup %2111  ;;  %v861_v0 = vmul.f32 1.442695, %v836_v58 }
 0x304   : > { %907 = vrot.lane.b32.xlu2 %v2112_v61, %s2293_s30  ;;  %v1125_v61 = vld [vmem:[#allocation2 + $0x2c0] sm:$0xff] }
 0x305   : > { %2113 = vpow2.f32 %v861_v0  ;;  %1127 = vmatpush.msrb.mxu2 %v1125_v61 }
 0x306   : > { %v793_v2 = vpop.f32.mrf.mxu0 }
 0x307   : > { %v2644_v7 = vadd.f32 %v793_v2, %v2592_v3 }
 0x309   : > { %v837_v9 = vmul.f32 0.5, %v2644_v7 }
 0x30b   : > { %v2114_v10 = vpop.eup %2113  ;;  %v863_v13 = vmul.f32 1.442695, %v837_v9 }
 0x30c   : > { %909 = vrot.lane.b32.xlu0 %v2114_v10, %s2293_s30 }
 0x30d   : > { %2115 = vpow2.f32 %v863_v13  ;;  %v1124_v13 = vld [vmem:[#allocation2 + $0x2b8] sm:$0xff] }
 0x30e   : > { %v796_v17 = vpop.f32.mrf.mxu0  ;;  %1128 = vmatpush.msrb.mxu2 %v1124_v13  ;;  %v812_v13 = vld [vmem:[%s2672_s8 + $0x8] sm:$0xff] }
 0x30f   : > { %v2649_v21 = vadd.f32 %v796_v17, %v2592_v3 }
 0x311   : > { %v838_v22 = vmul.f32 0.5, %v2649_v21 }
 0x313   : > { %v2116_v25 = vpop.eup %2115  ;;  %v865_v26 = vmul.f32 1.442695, %v838_v22 }
 0x314   : > { %911 = vrot.lane.b32.xlu1 %v2116_v25, %s2293_s30 }
 0x315   : > { %2117 = vpow2.f32 %v865_v26  ;;  %v1123_v26 = vld [vmem:[#allocation2 + $0x2b0] sm:$0xff] }
 0x316   : > { %v799_v36 = vpop.f32.mrf.mxu0  ;;  %1129 = vmatpush.msrb.mxu2 %v1123_v26 }
 0x317   : > { %v2654_v49 = vadd.f32 %v799_v36, %v2592_v3  ;;  %v811_v36 = vld [vmem:[%s2672_s8] sm:$0xff] }
 0x319   : > { %v839_v55 = vmul.f32 0.5, %v2654_v49 }
 0x31b   : > { %v2118_v37 = vpop.eup %2117  ;;  %v867_v58 = vmul.f32 1.442695, %v839_v55 }
 0x31c   : > { %913 = vrot.lane.b32.xlu2 %v2118_v37, %s2293_s30 }
 0x31d   : > { %2119 = vpow2.f32 %v867_v58 }
 0x31e   : > { %v802_v0 = vpop.f32.mrf.mxu0 }
 0x31f   : > { %v2659_v1 = vadd.f32 %v802_v0, %v2592_v3 }
 0x321   : > { %v840_v2 = vmul.f32 0.5, %v2659_v1 }
 0x323   : > { %v2120_v9 = vpop.eup %2119  ;;  %v869_v10 = vmul.f32 1.442695, %v840_v2 }
 0x324   : > { %915 = vrot.lane.b32.xlu0 %v2120_v9, %s2293_s30 }
 0x325   : > { %2121 = vpow2.f32 %v869_v10  ;;  %v1122_v10 = vld [vmem:[#allocation2 + $0x2a8] sm:$0xff] }
 0x326   : > { %v805_v16 = vpop.f32.mrf.mxu0  ;;  %1130 = vmatpush.msrb.mxu2 %v1122_v10  ;;  %v815_v10 = vld [vmem:[%s2672_s8 + $0x20] sm:$0xff] }
 0x327   : > { %v2664_v23 = vadd.f32 %v805_v16, %v2592_v3 }
 0x329   : > { %v841_v17 = vmul.f32 0.5, %v2664_v23 }
 0x32b   : > { %v2122_v22 = vpop.eup %2121  ;;  %v871_v25 = vmul.f32 1.442695, %v841_v17 }
 0x32c   : > { %917 = vrot.lane.b32.xlu1 %v2122_v22, %s2293_s30 }
 0x32d   : > { %2123 = vpow2.f32 %v871_v25  ;;  %v1121_v25 = vld [vmem:[#allocation2 + $0x2a0] sm:$0xff] }
 0x32e   : > { %v808_v30 = vpop.f32.mrf.mxu0  ;;  %1131 = vmatpush.msrb.mxu2 %v1121_v25 }
 0x32f   : > { %v2677_v55 = vadd.f32 %v808_v30, %v2592_v3 }
 0x330   : > { %v892_v37 = vpop.permute.xlu0 %891 }
 0x331   : > { %v842_v58 = vmul.f32 0.5, %v2677_v55  ;;  %v939_v61 = vmul.f32 %v892_v37, %v811_v36  ;;  %v1120_v37 = vld [vmem:[#allocation2 + $0x298] sm:$0xff] }
 0x332   : > { %1132 = vmatpush.msrb.mxu2 %v1120_v37  ;;  %v1115_v37 = vld [vmem:[#allocation2 + $0x270] sm:$0xff] }
 0x333   : > { %v2124_v0 = vpop.eup %2123  ;;  %v873_v2 = vmul.f32 1.442695, %v842_v58  ;;  %v955_v9 = vadd.f32 %v939_v61, %v2595_v8  ;;  %v813_v8 = vld [vmem:[%s2672_s8 + $0x10] sm:$0xff]  ;;  %v814_v61 = vld [vmem:[%s2672_s8 + $0x18] sm:$0xff] }
 0x334   : > { %919 = vrot.lane.b32.xlu2 %v2124_v0, %s2293_s30  ;;  %v1119_v58 = vld [vmem:[#allocation2 + $0x290] sm:$0xff] }
 0x335   : > { %2125 = vpow2.f32 %v873_v2  ;;  %1951 = vmatmul.msk.f32.vlgmr.msrb.gmra.mxu1 %vm980_vm1, %v955_v9  ;;  %1133 = vmatpush.msrb.mxu2 %v1119_v58  ;;  %v818_v58 = vld [vmem:[%s2672_s8 + $0x38] sm:$0xff] }
 0x338   : > { %v894_v3 = vpop.permute.xlu0 %893  ;;  %v900_v2 = vpop.permute.xlu2 %899 }
 0x339   : > { %v940_v16 = vmul.f32 %v894_v3, %v812_v13  ;;  %v943_v13 = vmul.f32 %v900_v2, %v815_v10  ;;  %v1118_v3 = vld [vmem:[#allocation2 + $0x288] sm:$0xff] }
 0x33a   : > { %1134 = vmatpush.msrb.mxu2 %v1118_v3  ;;  %v1706_v3 = vld [vmem:[#allocation2 + $0x438] sm:$0xff] }
 0x33b   : > { %v2126_v17 = vpop.eup %2125  ;;  %v956_v22 = vadd.f32 %v940_v16, %v2599_v15  ;;  %v816_v16 = vld [vmem:[%s2672_s8 + $0x28] sm:$0xff] }
 0x33c   : > { %921 = vrot.lane.b32.xlu0 %v2126_v17, %s2293_s30  ;;  %s1823_s30 = scalar_lea.sflag [#allocation4], %s249_s13 }
 0x33d   : > { %1952 = vmatmul.msk.f32.gmra.mxu1 %vm980_vm1, %v956_v22 }
 0x340   : > { %v896_v26 = vpop.permute.xlu1 %895  ;;  %v902_v17 = vpop.permute.xlu2 %901 }
 0x341   : > { %v941_v30 = vmul.f32 %v896_v26, %v813_v8  ;;  %v944_v22 = vmul.f32 %v902_v17, %v816_v16  ;;  %v1117_v8 = vld [vmem:[#allocation2 + $0x280] sm:$0xff]  ;;  %v820_v16 = vld [vmem:[%s2672_s8 + $0x48] sm:$0xff] }
 0x342   : > { %1135 = vmatpush.msrb.mxu2 %v1117_v8  ;;  %v1704_v8 = vld [vmem:[#allocation2 + $0x428] sm:$0xff] }
 0x343   : > { %v957_v36 = vadd.f32 %v941_v30, %v2604_v19  ;;  %v959_v19 = vadd.f32 %v943_v13, %v2614_v52  ;;  %v960_v25 = vadd.f32 %v944_v22, %v2619_v46  ;;  %v1707_v13 = vld [vmem:[#allocation2 + $0x440] sm:$0xff]  ;;  %v1705_v22 = vld [vmem:[#allocation2 + $0x430] sm:$0xff] }
 0x344   : > { %1709 = vmatpush.msra.mxu1 %v1707_v13 }
 0x345   : > { %1953 = vmatmul.msk.f32.gmra.mxu1 %vm980_vm1, %v957_v36  ;;  %v1116_v36 = vld [vmem:[#allocation2 + $0x278] sm:$0xff] }
 0x346   : > { %1136 = vmatpush.msrb.mxu2 %v1116_v36  ;;  %1710 = vmatpush.msra.mxu1 %v1706_v3 }
 0x348   : > { %v898_v15 = vpop.permute.xlu1 %897  ;;  %1137 = vmatpush.msrb.mxu2 %v1115_v37  ;;  %1711 = vmatpush.msra.mxu1 %v1705_v22 }
 0x349   : > { %v942_v0 = vmul.f32 %v898_v15, %v814_v61 }
 0x34a   : > { %1712 = vmatpush.msra.mxu1 %v1704_v8 }
 0x34b   : > { %v958_v9 = vadd.f32 %v942_v0, %v2609_v28  ;;  %v817_v28 = vld [vmem:[%s2672_s8 + $0x30] sm:$0xff]  ;;  %v819_v0 = vld [vmem:[%s2672_s8 + $0x40] sm:$0xff] }
 0x34d   : > { %1954 = vmatmul.msk.f32.gmra.mxu1 %vm980_vm1, %v958_v9  ;;  %v1114_v9 = vld [vmem:[#allocation2 + $0x268] sm:$0xff] }
 0x34e   : > { %1138 = vmatpush.msrb.mxu2 %v1114_v9 }
 0x355   : > { %1955 = vmatmul.msk.f32.gmra.mxu1 %vm980_vm1, %v959_v19  ;;  %v1113_v19 = vld [vmem:[#allocation2 + $0x260] sm:$0xff] }
 0x356   : > { %1139 = vmatpush.msrb.mxu2 %v1113_v19  ;;  %v1696_v19 = vld [vmem:[#allocation2 + $0x3e8] sm:$0xff] }
 0x35d   : > { %1956 = vmatmul.msk.f32.gmra.mxu1 %vm980_vm1, %v960_v25 }
 0x35e   : > { %v908_v2 = vpop.permute.xlu2 %907 }
 0x35f   : > { %v947_v10 = vmul.f32 %v908_v2, %v819_v0  ;;  %v1111_v0 = vld [vmem:[#allocation2 + $0x250] sm:$0xff]  ;;  %v1698_v2 = vld [vmem:[#allocation2 + $0x3f8] sm:$0xff] }
 0x360   : > { %v904_v26 = vpop.permute.xlu0 %903 }
 0x361   : > { %v945_v30 = vmul.f32 %v904_v26, %v817_v28  ;;  %v1112_v28 = vld [vmem:[#allocation2 + $0x258] sm:$0xff] }
 0x362   : > { %v1702_v26 = vld [vmem:[#allocation2 + $0x418] sm:$0xff]  ;;  %1140 = vmatpush.msrb.mxu2 %v1112_v28 }
 0x363   : > { %v961_v52 = vadd.f32 %v945_v30, %v2624_v5  ;;  %v963_v5 = vadd.f32 %v947_v10, %v2634_v29  ;;  %v1703_v29 = vld [vmem:[#allocation2 + $0x420] sm:$0xff]  ;;  %v821_v30 = vld [vmem:[%s2672_s8 + $0x50] sm:$0xff] }
 0x364   : > { %1713 = vmatpush.msra.mxu1 %v1703_v29  ;;  %1141 = vmatpush.msrb.mxu2 %v1111_v0  ;;  %v1697_v10 = vld [vmem:[#allocation2 + $0x3f0] sm:$0xff] }
 0x365   : > { %1957 = vmatmul.msk.f32.gmra.mxu1 %vm980_vm1, %v961_v52  ;;  %v1701_v52 = vld [vmem:[#allocation2 + $0x410] sm:$0xff] }
 0x366   : > { %1714 = vmatpush.msra.mxu1 %v1702_v26  ;;  %v825_v0 = vld [vmem:[%s2672_s8 + $0x70] sm:$0xff] }
 0x368   : > { %1715 = vmatpush.msra.mxu1 %v1701_v52 }
 0x36e   : > { %v906_v61 = vpop.permute.xlu1 %905 }
 0x36f   : > { %v946_v46 = vmul.f32 %v906_v61, %v818_v58  ;;  %v1700_v58 = vld [vmem:[#allocation2 + $0x408] sm:$0xff] }
 0x370   : > { %1716 = vmatpush.msra.mxu1 %v1700_v58 }
 0x371   : > { %v962_v15 = vadd.f32 %v946_v46, %v2630_v33 }
 0x373   : > { %1958 = vmatmul.msk.f32.gmra.mxu1 %vm980_vm1, %v962_v15  ;;  %v1699_v15 = vld [vmem:[#allocation2 + $0x400] sm:$0xff] }
 0x374   : > { %1717 = vmatpush.msra.mxu1 %v1699_v15 }
 0x376   : > { %v914_v46 = vpop.permute.xlu2 %913  ;;  %1718 = vmatpush.msra.mxu1 %v1698_v2 }
 0x378   : > { %1719 = vmatpush.msra.mxu1 %v1697_v10 }
 0x37a   : > { %1720 = vmatpush.msra.mxu1 %v1696_v19 }
 0x37b   : > { %1959 = vmatmul.msk.f32.gmra.mxu1 %vm980_vm1, %v963_v5 }
 0x37e   : > { %v910_v17 = vpop.permute.xlu0 %909 }
 0x37f   : > { %v948_v33 = vmul.f32 %v910_v17, %v820_v16  ;;  %v823_v16 = vld [vmem:[%s2672_s8 + $0x60] sm:$0xff]  ;;  %v1110_v17 = vld [vmem:[#allocation2 + $0x248] sm:$0xff] }
 0x380   : > { %1142 = vmatpush.msrb.mxu2 %v1110_v17 }
 0x381   : > { %v964_v25 = vadd.f32 %v948_v33, %v2639_v43  ;;  %v822_v43 = vld [vmem:[%s2672_s8 + $0x58] sm:$0xff] }
 0x382   : > { %v950_v9 = vmul.f32 %v914_v46, %v822_v43  ;;  %v1694_v33 = vld [vmem:[#allocation2 + $0x3d8] sm:$0xff]  ;;  %2023 = vmatpush.msra.mxu2 %v1707_v13 }
 0x383   : > { %1960 = vmatmul.msk.f32.gmra.mxu1 %vm980_vm1, %v964_v25 }
 0x384   : > { %v966_v5 = vadd.f32 %v950_v9, %v2649_v21  ;;  %2024 = vmatpush.msra.mxu2 %v1706_v3  ;;  %v1223_v3 = vld [vmem:[#allocation2 + $0x340] sm:$0xff] }
 0x385   : > { %1225 = vmatpush.msrb.mxu3 %v1223_v3 }
 0x386   : > { %v912_v36 = vpop.permute.xlu1 %911  ;;  %2025 = vmatpush.msra.mxu2 %v1705_v22 }
 0x387   : > { %v949_v37 = vmul.f32 %v912_v36, %v821_v30  ;;  %v1693_v30 = vld [vmem:[#allocation2 + $0x3d0] sm:$0xff]  ;;  %v1692_v36 = vld [vmem:[#allocation2 + $0x3c8] sm:$0xff] }
 0x388   : > { %2026 = vmatpush.msra.mxu2 %v1704_v8  ;;  %v826_v8 = vld [vmem:[%s2672_s8 + $0x78] sm:$0xff] }
 0x389   : > { %v965_v61 = vadd.f32 %v949_v37, %v2644_v7  ;;  %v1695_v7 = vld [vmem:[#allocation2 + $0x3e0] sm:$0xff]  ;;  %v824_v37 = vld [vmem:[%s2672_s8 + $0x68] sm:$0xff] }
 0x38a   : > { %1721 = vmatpush.msra.mxu1 %v1695_v7  ;;  %2027 = vmatpush.msra.mxu2 %v1703_v29  ;;  %v1222_v29 = vld [vmem:[#allocation2 + $0x338] sm:$0xff] }
 0x38b   : > { %1961 = vmatmul.msk.f32.gmra.mxu1 %vm980_vm1, %v965_v61  ;;  %1226 = vmatpush.msrb.mxu3 %v1222_v29 }
 0x38c   : > { %1722 = vmatpush.msra.mxu1 %v1694_v33  ;;  %2028 = vmatpush.msra.mxu2 %v1702_v26 }
 0x38e   : > { %1723 = vmatpush.msra.mxu1 %v1693_v30  ;;  %v920_v13 = vpop.permute.xlu2 %919  ;;  %2029 = vmatpush.msra.mxu2 %v1701_v52  ;;  %v2730_v52 = vld [vmem:[%s2921_s4] sm:$0xff] }
 0x38f   : > { %v2784_v27 = vperm.slane %v2730_v52, 6 }
 0x390   : > { %1724 = vmatpush.msra.mxu1 %v1692_v36  ;;  %2030 = vmatpush.msra.mxu2 %v1700_v58  ;;  %v2733_v58 = vperm.slane %v2730_v52, 5 }
 0x392   : > { %2031 = vmatpush.msra.mxu2 %v1699_v15 }
 0x393   : > { %1962 = vmatmul.msk.f32.gmra.mxu1 %vm980_vm1, %v966_v5 }
 0x394   : > { %2032 = vmatpush.msra.mxu2 %v1698_v2 }
 0x396   : > { %v916_v25 = vpop.permute.xlu0 %915  ;;  %2033 = vmatpush.msra.mxu2 %v1697_v10  ;;  %v1221_v10 = vld [vmem:[#allocation2 + $0x330] sm:$0xff] }
 0x397   : > { %v951_v28 = vmul.f32 %v916_v25, %v823_v16  ;;  %1227 = vmatpush.msrb.mxu3 %v1221_v10  ;;  %v1219_v25 = vld [vmem:[#allocation2 + $0x320] sm:$0xff] }
 0x398   : > { %2034 = vmatpush.msra.mxu2 %v1696_v19 }
 0x399   : > { %v967_v21 = vadd.f32 %v951_v28, %v2654_v49  ;;  %v953_v49 = vmul.f32 %v920_v13, %v825_v0  ;;  %v1214_v0 = vld [vmem:[#allocation2 + $0x2f8] sm:$0xff] }
 0x39a   : > { %2035 = vmatpush.msra.mxu2 %v1695_v7 }
 0x39b   : > { %1963 = vmatmul.msk.f32.gmra.mxu1 %vm980_vm1, %v967_v21  ;;  %v969_v22 = vadd.f32 %v953_v49, %v2664_v23  ;;  %v1213_v49 = vld [vmem:[#allocation2 + $0x2f0] sm:$0xff] }
 0x39c   : > { %2036 = vmatpush.msra.mxu2 %v1694_v33 }
 0x39e   : > { %v918_v61 = vpop.permute.xlu1 %917  ;;  %2037 = vmatpush.msra.mxu2 %v1693_v30 }
 0x39f   : > { %v952_v43 = vmul.f32 %v918_v61, %v824_v37 }
 0x3a0   : > { %2038 = vmatpush.msra.mxu2 %v1692_v36 }
 0x3a1   : > { %v968_v46 = vadd.f32 %v952_v43, %v2659_v1 }
 0x3a3   : > { %1964 = vmatmul.msk.f32.gmra.mxu1 %vm980_vm1, %v968_v46 }
 0x3ab   : > { %1965 = vmatmul.msk.f32.gmra.mxu1 %vm980_vm1, %v969_v22 }
 0x3ae   : > { %v922_v1 = vpop.permute.xlu0 %921 }
 0x3af   : > { %v954_v26 = vmul.f32 %v922_v1, %v826_v8 }
 0x3b1   : > { %v970_v23 = vadd.f32 %v954_v26, %v2677_v55  ;;  %v1220_v55 = vld [vmem:[#allocation2 + $0x328] sm:$0xff] }
 0x3b2   : > { %v1046_v15 = vpop.f32.mrf.mxu1  ;;  %1228 = vmatpush.msrb.mxu3 %v1220_v55  ;;  %v1320_v55 = vld [vmem:[#allocation2 + $0x3b8] sm:$0xff] }
 0x3b3   : > { %v1047_v2 = vadd.f32 %v1046_v15, %v2733_v58  ;;  %1966 = vmatmul.msk.f32.gmra.mxu1 %vm980_vm1, %v970_v23  ;;  %1324 = vmatpush.msra.mxu0 %v1320_v55 }
 0x3b4   : > { %1229 = vmatpush.msrb.mxu3 %v1219_v25  ;;  %v1318_v25 = vld [vmem:[#allocation2 + $0x3a8] sm:$0xff] }
 0x3b5   : > { %v1094_v9 = vmax.f32 %v1047_v2, 0.0  ;;  %1325 = vmatpush.msra.mxu0 %v1319_v32 }
 0x3b6   : > { %1230 = vmatpush.msrb.mxu3 %v1218_v39 }
 0x3b7   : > { %1143 = vmatmul.f32.vlgmr.msrb.gmra.mxu2 %v1094_v9  ;;  %1326 = vmatpush.msra.mxu0 %v1318_v25 }
 0x3ba   : > { %v1049_v5 = vpop.f32.mrf.mxu1 }
 0x3bb   : > { %v1050_v19 = vadd.f32 %v1049_v5, %v2733_v58  ;;  %1725 = vmatmul.f32.vlgmr.msra.gmra.mxu1 %v497_v40 }
 0x3bd   : > { %v1095_v7 = vmax.f32 %v1050_v19, 0.0 }
 0x3bf   : > { %1146 = vmatmul.f32.gmra.mxu2 %v1095_v7 }
 0x3c2   : > { %v1052_v16 = vpop.f32.mrf.mxu1 }
 0x3c3   : > { %v1053_v17 = vadd.f32 %v1052_v16, %v2733_v58  ;;  %1728 = vmatmul.f32.gmra.mxu1 %v498_v42  ;;  %v1217_v42 = vld [vmem:[#allocation2 + $0x310] sm:$0xff] }
 0x3c4   : > { %1231 = vmatpush.msrb.mxu3 %v1217_v42 }
 0x3c5   : > { %v1096_v33 = vmax.f32 %v1053_v17, 0.0 }
 0x3c7   : > { %1149 = vmatmul.f32.gmra.mxu2 %v1096_v33 }
 0x3ca   : > { %v1055_v28 = vpop.f32.mrf.mxu1 }
 0x3cb   : > { %v1056_v30 = vadd.f32 %v1055_v28, %v2733_v58  ;;  %1731 = vmatmul.f32.gmra.mxu1 %v499_v45  ;;  %v1216_v45 = vld [vmem:[#allocation2 + $0x308] sm:$0xff] }
 0x3cc   : > { %1232 = vmatpush.msrb.mxu3 %v1216_v45 }
 0x3cd   : > { %v1097_v40 = vmax.f32 %v1056_v30, 0.0 }
 0x3cf   : > { %1152 = vmatmul.f32.gmra.mxu2 %v1097_v40  ;;  %v1317_v40 = vld [vmem:[#allocation2 + $0x3a0] sm:$0xff] }
 0x3d0   : > { %1327 = vmatpush.msra.mxu0 %v1317_v40 }
 0x3d2   : > { %v1058_v21 = vpop.f32.mrf.mxu1 }
 0x3d3   : > { %v1059_v36 = vadd.f32 %v1058_v21, %v2733_v58  ;;  %1734 = vmatmul.f32.gmra.mxu1 %v500_v48  ;;  %v1215_v48 = vld [vmem:[#allocation2 + $0x300] sm:$0xff] }
 0x3d4   : > { %1233 = vmatpush.msrb.mxu3 %v1215_v48 }
 0x3d5   : > { %v1098_v41 = vmax.f32 %v1059_v36, 0.0 }
 0x3d6   : > { %1234 = vmatpush.msrb.mxu3 %v1214_v0 }
 0x3d7   : > { %1155 = vmatmul.f32.gmra.mxu2 %v1098_v41 }
 0x3d8   : > { %1235 = vmatpush.msrb.mxu3 %v1213_v49 }
 0x3da   : > { %v1061_v37 = vpop.f32.mrf.mxu1  ;;  %1236 = vmatpush.msrb.mxu3 %v1212_v56 }
 0x3db   : > { %v1062_v61 = vadd.f32 %v1061_v37, %v2733_v58  ;;  %1737 = vmatmul.f32.gmra.mxu1 %v501_v51 }
 0x3dc   : > { %1237 = vmatpush.msrb.mxu3 %v1211_v59 }
 0x3dd   : > { %v1099_v44 = vmax.f32 %v1062_v61, 0.0  ;;  %v1315_v61 = vld [vmem:[#allocation2 + $0x390] sm:$0xff] }
 0x3de   : > { %1238 = vmatpush.msrb.mxu3 %v1210_v62 }
 0x3df   : > { %1158 = vmatmul.f32.gmra.mxu2 %v1099_v44 }
 0x3e0   : > { %1239 = vmatpush.msrb.mxu3 %v1209_v4 }
 0x3e2   : > { %v1064_v43 = vpop.f32.mrf.mxu1  ;;  %1240 = vmatpush.msrb.mxu3 %v1208_v11 }
 0x3e3   : > { %v1065_v46 = vadd.f32 %v1064_v43, %v2733_v58  ;;  %1740 = vmatmul.f32.gmra.mxu1 %v502_v54 }
 0x3e5   : > { %v1100_v47 = vmax.f32 %v1065_v46, 0.0  ;;  %v1314_v46 = vld [vmem:[#allocation2 + $0x388] sm:$0xff] }
 0x3e7   : > { %1161 = vmatmul.f32.gmra.mxu2 %v1100_v47 }
 0x3eb   : > { %1743 = vmatmul.f32.gmra.mxu1 %v503_v57 }
 0x3f0   : > { %v1067_v50 = vpop.f32.mrf.mxu1 }
 0x3f1   : > { %v1068_v51 = vadd.f32 %v1067_v50, %v2733_v58  ;;  %v1313_v50 = vld [vmem:[#allocation2 + $0x380] sm:$0xff] }
 0x3f3   : > { %v1101_v13 = vmax.f32 %v1068_v51, 0.0  ;;  %1746 = vmatmul.f32.gmra.mxu1 %v504_v60  ;;  %v1312_v51 = vld [vmem:[#allocation2 + $0x378] sm:$0xff] }
 0x3f5   : > { %1164 = vmatmul.f32.gmra.mxu2 %v1101_v13 }
 0x3f8   : > { %v1070_v53 = vpop.f32.mrf.mxu1 }
 0x3f9   : > { %v1071_v54 = vadd.f32 %v1070_v53, %v2733_v58 }
 0x3fb   : > { %v1102_v3 = vmax.f32 %v1071_v54, 0.0  ;;  %1749 = vmatmul.f32.gmra.mxu1 %v505_v63  ;;  %v1311_v54 = vld [vmem:[#allocation2 + $0x370] sm:$0xff] }
 0x3fd   : > { %1167 = vmatmul.f32.gmra.mxu2 %v1102_v3 }
 0x400   : > { %v1073_v57 = vpop.f32.mrf.mxu1 }
 0x401   : > { %v1074_v22 = vadd.f32 %v1073_v57, %v2733_v58 }
 0x403   : > { %v1103_v8 = vmax.f32 %v1074_v22, 0.0  ;;  %1752 = vmatmul.f32.gmra.mxu1 %v506_v6  ;;  %v1310_v22 = vld [vmem:[#allocation2 + $0x368] sm:$0xff] }
 0x405   : > { %1170 = vmatmul.f32.gmra.mxu2 %v1103_v8 }
 0x408   : > { %v1076_v60 = vpop.f32.mrf.mxu1 }
 0x409   : > { %v1077_v29 = vadd.f32 %v1076_v60, %v2733_v58 }
 0x40b   : > { %v1104_v1 = vmax.f32 %v1077_v29, 0.0  ;;  %1755 = vmatmul.f32.gmra.mxu1 %v507_v12  ;;  %v1309_v29 = vld [vmem:[#allocation2 + $0x360] sm:$0xff] }
 0x40d   : > { %1173 = vmatmul.f32.gmra.mxu2 %v1104_v1 }
 0x410   : > { %v1079_v63 = vpop.f32.mrf.mxu1 }
 0x411   : > { %v1080_v26 = vadd.f32 %v1079_v63, %v2733_v58 }
 0x413   : > { %v1105_v23 = vmax.f32 %v1080_v26, 0.0  ;;  %1758 = vmatmul.f32.gmra.mxu1 %v508_v18  ;;  %v1308_v26 = vld [vmem:[#allocation2 + $0x358] sm:$0xff] }
 0x415   : > { %1176 = vmatmul.f32.gmra.mxu2 %v1105_v23 }
 0x418   : > { %v1082_v6 = vpop.f32.mrf.mxu1 }
 0x419   : > { %v1083_v15 = vadd.f32 %v1082_v6, %v2733_v58 }
 0x41b   : > { %v1106_v2 = vmax.f32 %v1083_v15, 0.0  ;;  %1761 = vmatmul.f32.gmra.mxu1 %v509_v24  ;;  %v1307_v15 = vld [vmem:[#allocation2 + $0x350] sm:$0xff] }
 0x41d   : > { %1179 = vmatmul.f32.gmra.mxu2 %v1106_v2 }
 0x420   : > { %v1085_v12 = vpop.f32.mrf.mxu1 }
 0x421   : > { %v1086_v9 = vadd.f32 %v1085_v12, %v2733_v58 }
 0x423   : > { %v1107_v10 = vmax.f32 %v1086_v9, 0.0  ;;  %1764 = vmatmul.f32.gmra.mxu1 %v510_v31  ;;  %v1306_v9 = vld [vmem:[#allocation2 + $0x348] sm:$0xff] }
 0x425   : > { %1182 = vmatmul.f32.gmra.mxu2 %v1107_v10 }
 0x428   : > { %v1088_v14 = vpop.f32.mrf.mxu1 }
 0x429   : > { %v1089_v18 = vadd.f32 %v1088_v14, %v2733_v58 }
 0x42b   : > { %v1108_v5 = vmax.f32 %v1089_v18, 0.0  ;;  %1767 = vmatmul.f32.gmra.mxu1 %v511_v35 }
 0x42d   : > { %1185 = vmatmul.f32.gmra.mxu2 %v1108_v5 }
 0x430   : > { %v1091_v24 = vpop.f32.mrf.mxu1 }
 0x431   : > { %v1092_v19 = vadd.f32 %v1091_v24, %v2733_v58 }
 0x433   : > { %v1109_v7 = vmax.f32 %v1092_v19, 0.0 }
 0x435   : > { %1188 = vmatmul.f32.gmra.mxu2 %v1109_v7 }
 0x43a   : > { %v1144_v31 = vpop.f32.mrf.mxu2 }
 0x43b   : > { %v1145_v16 = vadd.f32 %v1144_v31, %v2784_v27  ;;  %v2805_v31 = vperm.slane %v2730_v52, 7 }
 0x43d   : > { %v1192_v17 = vmax.f32 %v1145_v16, 0.0  ;;  %1770 = vmatmul.f32.vlgmr.msra.gmra.mxu2 %v512_v34  ;;  %v1316_v34 = vld [vmem:[#allocation2 + $0x398] sm:$0xff] }
 0x43e   : > { %1328 = vmatpush.msra.mxu0 %v1316_v34 }
 0x43f   : > { %1241 = vmatmul.f32.vlgmr.msrb.gmra.mxu3 %v1192_v17 }
 0x440   : > { %1329 = vmatpush.msra.mxu0 %v1315_v61 }
 0x442   : > { %v1147_v35 = vpop.f32.mrf.mxu2  ;;  %1330 = vmatpush.msra.mxu0 %v1314_v46 }
 0x443   : > { %v1148_v58 = vadd.f32 %v1147_v35, %v2784_v27 }
 0x444   : > { %1331 = vmatpush.msra.mxu0 %v1313_v50 }
 0x445   : > { %v1193_v33 = vmax.f32 %v1148_v58, 0.0 }
 0x446   : > { %1332 = vmatpush.msra.mxu0 %v1312_v51 }
 0x447   : > { %1244 = vmatmul.f32.gmra.mxu3 %v1193_v33 }
 0x448   : > { %1333 = vmatpush.msra.mxu0 %v1311_v54 }
 0x44a   : > { %v1150_v28 = vpop.f32.mrf.mxu2  ;;  %1334 = vmatpush.msra.mxu0 %v1310_v22 }
 0x44b   : > { %v1151_v30 = vadd.f32 %v1150_v28, %v2784_v27 }
 0x44c   : > { %1335 = vmatpush.msra.mxu0 %v1309_v29 }
 0x44d   : > { %v1194_v39 = vmax.f32 %v1151_v30, 0.0 }
 0x44e   : > { %1336 = vmatpush.msra.mxu0 %v1308_v26  ;;  %v266_v26 = vld [vmem:[%s2921_s4 + $0x8] sm:$0xff] }
 0x44f   : > { %1247 = vmatmul.f32.gmra.mxu3 %v1194_v39 }
 0x450   : > { %1337 = vmatpush.msra.mxu0 %v1307_v15 }
 0x452   : > { %v1153_v21 = vpop.f32.mrf.mxu2  ;;  %1338 = vmatpush.msra.mxu0 %v1306_v9 }
 0x453   : > { %v1154_v38 = vadd.f32 %v1153_v21, %v2784_v27 }
 0x455   : > { %v1195_v36 = vmax.f32 %v1154_v38, 0.0 }
 0x457   : > { %1250 = vmatmul.f32.gmra.mxu3 %v1195_v36 }
 0x45a   : > { %v1156_v41 = vpop.f32.mrf.mxu2 }
 0x45b   : > { %v1157_v42 = vadd.f32 %v1156_v41, %v2784_v27 }
 0x45d   : > { %v1196_v37 = vmax.f32 %v1157_v42, 0.0 }
 0x45f   : > { %1253 = vmatmul.f32.gmra.mxu3 %v1196_v37 }
 0x462   : > { %v1159_v44 = vpop.f32.mrf.mxu2 }
 0x463   : > { %v1160_v45 = vadd.f32 %v1159_v44, %v2784_v27 }
 0x465   : > { %v1197_v43 = vmax.f32 %v1160_v45, 0.0 }
 0x467   : > { %1256 = vmatmul.f32.gmra.mxu3 %v1197_v43 }
 0x46a   : > { %v1162_v47 = vpop.f32.mrf.mxu2 }
 0x46b   : > { %v1163_v48 = vadd.f32 %v1162_v47, %v2784_v27 }
 0x46d   : > { %v1198_v0 = vmax.f32 %v1163_v48, 0.0 }
 0x46f   : > { %1259 = vmatmul.f32.gmra.mxu3 %v1198_v0 }
 0x478   : > { %v1165_v13 = vpop.f32.mrf.mxu2 }
 0x479   : > { %v1166_v49 = vadd.f32 %v1165_v13, %v2784_v27 }
 0x47b   : > { %v1199_v53 = vmax.f32 %v1166_v49, 0.0 }
 0x47d   : > { %1262 = vmatmul.f32.gmra.mxu3 %v1199_v53 }
 0x480   : > { %v1168_v3 = vpop.f32.mrf.mxu2 }
 0x481   : > { %v1169_v56 = vadd.f32 %v1168_v3, %v2784_v27 }
 0x483   : > { %v1200_v57 = vmax.f32 %v1169_v56, 0.0 }
 0x485   : > { %1265 = vmatmul.f32.gmra.mxu3 %v1200_v57 }
 0x488   : > { %v1171_v8 = vpop.f32.mrf.mxu2 }
 0x489   : > { %v1172_v59 = vadd.f32 %v1171_v8, %v2784_v27 }
 0x48b   : > { %v1201_v60 = vmax.f32 %v1172_v59, 0.0 }
 0x48d   : > { %1268 = vmatmul.f32.gmra.mxu3 %v1201_v60 }
 0x490   : > { %v1174_v1 = vpop.f32.mrf.mxu2 }
 0x491   : > { %v1175_v62 = vadd.f32 %v1174_v1, %v2784_v27 }
 0x493   : > { %v1202_v63 = vmax.f32 %v1175_v62, 0.0 }
 0x495   : > { %1271 = vmatmul.f32.gmra.mxu3 %v1202_v63 }
 0x498   : > { %v1177_v23 = vpop.f32.mrf.mxu2 }
 0x499   : > { %v1178_v4 = vadd.f32 %v1177_v23, %v2784_v27 }
 0x49b   : > { %v1203_v6 = vmax.f32 %v1178_v4, 0.0 }
 0x49d   : > { %1274 = vmatmul.f32.gmra.mxu3 %v1203_v6  ;;  %v2826_v6 = vperm.slane %v266_v26, 0 }
 0x4a0   : > { %v1180_v2 = vpop.f32.mrf.mxu2 }
 0x4a1   : > { %v1181_v11 = vadd.f32 %v1180_v2, %v2784_v27  ;;  %v1726_v2 = vpop.f32.mrf.mxu1 }
 0x4a3   : > { %v1204_v12 = vmax.f32 %v1181_v11, 0.0 }
 0x4a5   : > { %1277 = vmatmul.f32.gmra.mxu3 %v1204_v12 }
 0x4a8   : > { %v1183_v10 = vpop.f32.mrf.mxu2 }
 0x4a9   : > { %v1184_v14 = vadd.f32 %v1183_v10, %v2784_v27 }
 0x4ab   : > { %v1205_v18 = vmax.f32 %v1184_v14, 0.0 }
 0x4ad   : > { %1280 = vmatmul.f32.gmra.mxu3 %v1205_v18  ;;  %v1729_v18 = vpop.f32.mrf.mxu1 }
 0x4b0   : > { %v1186_v5 = vpop.f32.mrf.mxu2 }
 0x4b1   : > { %v1187_v20 = vadd.f32 %v1186_v5, %v2784_v27 }
 0x4b3   : > { %v1206_v24 = vmax.f32 %v1187_v20, 0.0 }
 0x4b5   : > { %1283 = vmatmul.f32.gmra.mxu3 %v1206_v24 }
 0x4b8   : > { %v1189_v19 = vpop.f32.mrf.mxu2 }
 0x4b9   : > { %v1190_v7 = vadd.f32 %v1189_v19, %v2784_v27 }
 0x4bb   : > { %v1207_v55 = vmax.f32 %v1190_v7, 0.0 }
 0x4bd   : > { %1286 = vmatmul.f32.gmra.mxu3 %v1207_v55 }
 0x4c2   : > { %v1242_v16 = vpop.f32.mrf.mxu3 }
 0x4c3   : > { %v1243_v17 = vadd.f32 %v1242_v16, %v2805_v31 }
 0x4c5   : > { %v1290_v32 = vmax.f32 %v1243_v17, 0.0  ;;  %v2831_v17 = vperm.slane %v266_v26, 1 }
 0x4c7   : > { %1339 = vmatmul.f32.vlgmr.msra.gmra.mxu0 %v1290_v32  ;;  %v1732_v32 = vpop.f32.mrf.mxu1 }
 0x4ca   : > { %v1245_v35 = vpop.f32.mrf.mxu3 }
 0x4cb   : > { %v1246_v58 = vadd.f32 %v1245_v35, %v2805_v31 }
 0x4cd   : > { %v1291_v33 = vmax.f32 %v1246_v58, 0.0 }
 0x4cf   : > { %1342 = vmatmul.f32.gmra.mxu0 %v1291_v33 }
 0x4d2   : > { %v1248_v25 = vpop.f32.mrf.mxu3 }
 0x4d3   : > { %v1249_v28 = vadd.f32 %v1248_v25, %v2805_v31  ;;  %v1727_v25 = vadd.f32 %v1726_v2, %v2831_v17 }
 0x4d5   : > { %v1292_v30 = vmax.f32 %v1249_v28, 0.0 }
 0x4d7   : > { %1345 = vmatmul.f32.gmra.mxu0 %v1292_v30 }
 0x4da   : > { %v1251_v27 = vpop.f32.mrf.mxu3 }
 0x4db   : > { %v1252_v39 = vadd.f32 %v1251_v27, %v2805_v31 }
 0x4dd   : > { %v1293_v52 = vmax.f32 %v1252_v39, 0.0 }
 0x4df   : > { %1348 = vmatmul.f32.gmra.mxu0 %v1293_v52 }
 0x4e2   : > { %v1254_v40 = vpop.f32.mrf.mxu3 }
 0x4e3   : > { %v1255_v21 = vadd.f32 %v1254_v40, %v2805_v31 }
 0x4e5   : > { %v1294_v38 = vmax.f32 %v1255_v21, 0.0 }
 0x4e7   : > { %1351 = vmatmul.f32.gmra.mxu0 %v1294_v38 }
 0x4ea   : > { %v1257_v34 = vpop.f32.mrf.mxu3 }
 0x4eb   : > { %v1258_v36 = vadd.f32 %v1257_v34, %v2805_v31 }
 0x4ed   : > { %v1295_v41 = vmax.f32 %v1258_v36, 0.0  ;;  %v1774_v36 = vmax.f32 %v1727_v25, 0.0 }
 0x4ef   : > { %1354 = vmatmul.f32.gmra.mxu0 %v1295_v41 }
 0x4f2   : > { %v1260_v42 = vpop.f32.mrf.mxu3 }
 0x4f3   : > { %v1261_v37 = vadd.f32 %v1260_v42, %v2805_v31 }
 0x4f5   : > { %v1296_v61 = vmax.f32 %v1261_v37, 0.0 }
 0x4f7   : > { %1357 = vmatmul.f32.gmra.mxu0 %v1296_v61 }
 0x500   : > { %v1263_v44 = vpop.f32.mrf.mxu3 }
 0x501   : > { %v1264_v45 = vadd.f32 %v1263_v44, %v2805_v31  ;;  %v1735_v44 = vpop.f32.mrf.mxu1 }
 0x503   : > { %v1297_v43 = vmax.f32 %v1264_v45, 0.0 }
 0x505   : > { %1360 = vmatmul.f32.gmra.mxu0 %v1297_v43 }
 0x508   : > { %v1266_v46 = vpop.f32.mrf.mxu3 }
 0x509   : > { %v1267_v47 = vadd.f32 %v1266_v46, %v2805_v31 }
 0x50b   : > { %v1298_v48 = vmax.f32 %v1267_v47, 0.0  ;;  %v1730_v47 = vadd.f32 %v1729_v18, %v2831_v17 }
 0x50d   : > { %1363 = vmatmul.f32.gmra.mxu0 %v1298_v48 }
 0x510   : > { %v1269_v0 = vpop.f32.mrf.mxu3 }
 0x511   : > { %v1270_v50 = vadd.f32 %v1269_v0, %v2805_v31 }
 0x513   : > { %v1299_v51 = vmax.f32 %v1270_v50, 0.0 }
 0x515   : > { %1366 = vmatmul.f32.gmra.mxu0 %v1299_v51 }
 0x518   : > { %v1272_v13 = vpop.f32.mrf.mxu3 }
 0x519   : > { %v1273_v49 = vadd.f32 %v1272_v13, %v2805_v31 }
 0x51b   : > { %v1300_v53 = vmax.f32 %v1273_v49, 0.0 }
 0x51d   : > { %1369 = vmatmul.f32.gmra.mxu0 %v1300_v53 }
 0x520   : > { %v1275_v54 = vpop.f32.mrf.mxu3 }
 0x521   : > { %v1276_v3 = vadd.f32 %v1275_v54, %v2805_v31 }
 0x523   : > { %v1301_v56 = vmax.f32 %v1276_v3, 0.0 }
 0x525   : > { %1372 = vmatmul.f32.gmra.mxu0 %v1301_v56  ;;  %v1775_v56 = vmax.f32 %v1730_v47, 0.0 }
 0x528   : > { %v1278_v57 = vpop.f32.mrf.mxu3 }
 0x529   : > { %v1279_v22 = vadd.f32 %v1278_v57, %v2805_v31 }
 0x52b   : > { %v1302_v8 = vmax.f32 %v1279_v22, 0.0 }
 0x52d   : > { %1375 = vmatmul.f32.gmra.mxu0 %v1302_v8 }
 0x530   : > { %v1281_v59 = vpop.f32.mrf.mxu3 }
 0x531   : > { %v1282_v60 = vadd.f32 %v1281_v59, %v2805_v31 }
 0x533   : > { %v1303_v29 = vmax.f32 %v1282_v60, 0.0 }
 0x535   : > { %1378 = vmatmul.f32.gmra.mxu0 %v1303_v29 }
 0x538   : > { %v1284_v1 = vpop.f32.mrf.mxu3 }
 0x539   : > { %v1285_v62 = vadd.f32 %v1284_v1, %v2805_v31 }
 0x53b   : > { %v1304_v63 = vmax.f32 %v1285_v62, 0.0  ;;  %v1733_v62 = vadd.f32 %v1732_v32, %v2831_v17 }
 0x53d   : > { %1381 = vmatmul.f32.gmra.mxu0 %v1304_v63  ;;  %v1738_v63 = vpop.f32.mrf.mxu1 }
 0x540   : > { %v1287_v23 = vpop.f32.mrf.mxu3 }
 0x541   : > { %v1288_v4 = vadd.f32 %v1287_v23, %v2805_v31 }
 0x543   : > { %v1305_v15 = vmax.f32 %v1288_v4, 0.0 }
 0x544   : > { %v1340_v11 = vpop.f32.mrf.mxu0 }
 0x545   : > { %v1341_v12 = vadd.f32 %v1340_v11, %v2826_v6  ;;  %1384 = vmatmul.f32.gmra.mxu0 %v1305_v15  ;;  %v1741_v25 = vpop.f32.mrf.mxu1 }
 0x547   : > { %v1967_v9 = vmul.f32 -1.442695, %v1341_v12 }
 0x549   : > { %2127 = vpow2.f32 %v1967_v9 }
 0x54c   : > { %v1343_v10 = vpop.f32.mrf.mxu0 }
 0x54d   : > { %v1344_v14 = vadd.f32 %v1343_v10, %v2826_v6 }
 0x54f   : > { %v2128_v5 = vpop.eup %2127  ;;  %v1968_v20 = vmul.f32 -1.442695, %v1344_v14  ;;  %v1776_v14 = vmax.f32 %v1733_v62, 0.0 }
 0x550   : > { %v1436_v24 = vadd.f32 1.0, %v2128_v5 }
 0x551   : > { %2129 = vpow2.f32 %v1968_v20 }
 0x552   : > { %2131 = vrcp.f32 %v1436_v24  ;;  %v1463_v28 = vand.u32 2147483648, %v1436_v24  ;;  %v1461_v39 = vand.u32 2147483647, %v1436_v24  ;;  %vm1457_vm3 = vweird.f32 %v1436_v24 }
 0x554   : > { %v1346_v19 = vpop.f32.mrf.mxu0  ;;  %v1464_v41 = vor.u32 1.1754944e-38, %v1463_v28  ;;  %vm1462_vm5 = vcmp.eq.f32.partialorder %v1461_v39, 8.507059e+37 }
 0x555   : > { %v1347_v7 = vadd.f32 %v1346_v19, %v2826_v6 }
 0x557   : > { %v2130_v55 = vpop.eup %2129  ;;  %v1969_v31 = vmul.f32 -1.442695, %v1347_v7 }
 0x558   : > { %v2132_v16 = vpop.eup %2131  ;;  %v1437_v35 = vadd.f32 1.0, %v2130_v55 }
 0x559   : > { %v1453_v58 = vmul.f32 %v2132_v16, %v1436_v24  ;;  %2133 = vpow2.f32 %v1969_v31  ;;  %vm1458_vm2 = vweird.f32 %v2132_v16  ;;  %v1736_v31 = vadd.f32 %v1735_v44, %v2831_v17 }
 0x55a   : > { %2135 = vrcp.f32 %v1437_v35  ;;  %vm1459_vm4 = vmor %vm1457_vm3, %vm1458_vm2  ;;  %v1478_v48 = vand.u32 2147483648, %v1437_v35  ;;  %v1476_v51 = vand.u32 2147483647, %v1437_v35  ;;  %vm1472_vm7 = vweird.f32 %v1437_v35 }
 0x55b   : > { %v1454_v33 = vsub.f32 1.0, %v1453_v58 }
 0x55c   : > { %v1349_v30 = vpop.f32.mrf.mxu0  ;;  %v1479_v57 = vor.u32 1.1754944e-38, %v1478_v48  ;;  %vm1477_vm9 = vcmp.eq.f32.partialorder %v1476_v51, 8.507059e+37  ;;  %v1744_v48 = vpop.f32.mrf.mxu1 }
 0x55d   : > { %v1455_v27 = vmul.f32 %v2132_v16, %v1454_v33  ;;  %v1350_v52 = vadd.f32 %v1349_v30, %v2826_v6 }
 0x55f   : > { %v2134_v40 = vpop.eup %2133  ;;  %v1456_v21 = vadd.f32 %v2132_v16, %v1455_v27  ;;  %v1970_v38 = vmul.f32 -1.442695, %v1350_v52  ;;  %v1777_v52 = vmax.f32 %v1736_v31, 0.0 }
 0x560   : > { %v2136_v34 = vpop.eup %2135  ;;  %v1438_v42 = vadd.f32 1.0, %v2134_v40 }
 0x561   : > { %v1460_v37 = vsel %vm1459_vm4, %v2132_v16, %v1456_v21  ;;  %v1468_v61 = vmul.f32 %v2136_v34, %v1437_v35  ;;  %2137 = vpow2.f32 %v1970_v38  ;;  %vm1473_vm6 = vweird.f32 %v2136_v34 }
 0x562   : > { %v1465_v45 = vsel %vm1462_vm5, %v1464_v41, %v1460_v37  ;;  %2139 = vrcp.f32 %v1438_v42  ;;  %vm1474_vm8 = vmor %vm1472_vm7, %vm1473_vm6  ;;  %v1493_v26 = vand.u32 2147483648, %v1438_v42  ;;  %v1491_v15 = vand.u32 2147483647, %v1438_v42 }
 0x563   : > { %v1790_v43 = vadd.f32 %v1774_v36, %v1465_v45  ;;  %v1469_v46 = vsub.f32 1.0, %v1468_v61  ;;  %vm1487_vm11 = vweird.f32 %v1438_v42  ;;  %v1739_v61 = vadd.f32 %v1738_v63, %v2831_v17 }
 0x564   : > { %v1352_v0 = vpop.f32.mrf.mxu0  ;;  %v1494_v18 = vor.u32 1.1754944e-38, %v1493_v26  ;;  %vm1492_vm13 = vcmp.eq.f32.partialorder %v1491_v15, 8.507059e+37  ;;  %v1747_v15 = vpop.f32.mrf.mxu1 }
 0x565   : > { %1806 = vst [vmem:[%s2839_s15] sm:$0xff] %v1790_v43  ;;  %v1470_v50 = vmul.f32 %v2136_v34, %v1469_v46  ;;  %v1353_v13 = vadd.f32 %v1352_v0, %v2826_v6  ;;  %v1778_v51 = vmax.f32 %v1739_v61, 0.0 }
 0x567   : > { %v2138_v49 = vpop.eup %2137  ;;  %v1471_v53 = vadd.f32 %v2136_v34, %v1470_v50  ;;  %v1971_v54 = vmul.f32 -1.442695, %v1353_v13 }
 0x568   : > { %v2140_v3 = vpop.eup %2139  ;;  %v1439_v22 = vadd.f32 1.0, %v2138_v49 }
 0x569   : > { %v1475_v8 = vsel %vm1474_vm8, %v2136_v34, %v1471_v53  ;;  %v1483_v59 = vmul.f32 %v2140_v3, %v1438_v42  ;;  %2141 = vpow2.f32 %v1971_v54  ;;  %vm1488_vm10 = vweird.f32 %v2140_v3 }
 0x56a   : > { %v1480_v60 = vsel %vm1477_vm9, %v1479_v57, %v1475_v8  ;;  %2143 = vrcp.f32 %v1439_v22  ;;  %vm1489_vm12 = vmor %vm1487_vm11, %vm1488_vm10  ;;  %v1508_v16 = vand.u32 2147483648, %v1439_v22  ;;  %v1506_v58 = vand.u32 2147483647, %v1439_v22 }
 0x56b   : > { %v1791_v29 = vadd.f32 %v1775_v56, %v1480_v60  ;;  %v1484_v1 = vsub.f32 1.0, %v1483_v59  ;;  %vm1502_vm15 = vweird.f32 %v1439_v22 }
 0x56c   : > { %v1355_v23 = vpop.f32.mrf.mxu0  ;;  %v1509_v40 = vor.u32 1.1754944e-38, %v1508_v16  ;;  %vm1507_vm1 = vcmp.eq.f32.partialorder %v1506_v58, 8.507059e+37 }
 0x56d   : > { %1807 = vst [vmem:[%s2839_s15 + $0x8] sm:$0xff] %v1791_v29  ;;  %v1485_v4 = vmul.f32 %v2140_v3, %v1484_v1  ;;  %v1356_v2 = vadd.f32 %v1355_v23, %v2826_v6 }
 0x56f   : > { %v2142_v11 = vpop.eup %2141  ;;  %v1486_v12 = vadd.f32 %v2140_v3, %v1485_v4  ;;  %v1972_v9 = vmul.f32 -1.442695, %v1356_v2 }
 0x570   : > { %v2144_v10 = vpop.eup %2143  ;;  %v1440_v5 = vadd.f32 1.0, %v2142_v11 }
 0x571   : > { %v1490_v20 = vsel %vm1489_vm12, %v2140_v3, %v1486_v12  ;;  %v1498_v24 = vmul.f32 %v2144_v10, %v1439_v22  ;;  %2145 = vpow2.f32 %v1972_v9  ;;  %vm1503_vm14 = vweird.f32 %v2144_v10 }
 0x572   : > { %v1495_v19 = vsel %vm1492_vm13, %v1494_v18, %v1490_v20  ;;  %2147 = vrcp.f32 %v1440_v5  ;;  %vm1504_vm0 = vmor %vm1502_vm15, %vm1503_vm14  ;;  %v1523_v37 = vand.u32 2147483648, %v1440_v5  ;;  %v1521_v45 = vand.u32 2147483647, %v1440_v5 }
 0x573   : > { %v1792_v7 = vadd.f32 %v1776_v14, %v1495_v19  ;;  %v1499_v55 = vsub.f32 1.0, %v1498_v24  ;;  %vm1517_vm3 = vweird.f32 %v1440_v5  ;;  %v1742_v22 = vadd.f32 %v1741_v25, %v2831_v17 }
 0x574   : > { %v1358_v32 = vpop.f32.mrf.mxu0  ;;  %v1524_v0 = vor.u32 1.1754944e-38, %v1523_v37  ;;  %vm1522_vm5 = vcmp.eq.f32.partialorder %v1521_v45, 8.507059e+37  ;;  %v1745_v14 = vadd.f32 %v1744_v48, %v2831_v17 }
 0x575   : > { %1808 = vst [vmem:[%s2839_s15 + $0x10] sm:$0xff] %v1792_v7  ;;  %v1500_v35 = vmul.f32 %v2144_v10, %v1499_v55  ;;  %v1359_v33 = vadd.f32 %v1358_v32, %v2826_v6  ;;  %v1779_v26 = vmax.f32 %v1742_v22, 0.0 }
 0x576   : > { %v1780_v16 = vmax.f32 %v1745_v14, 0.0 }
 0x577   : > { %v2146_v28 = vpop.eup %2145  ;;  %v1501_v30 = vadd.f32 %v2144_v10, %v1500_v35  ;;  %v1973_v27 = vmul.f32 -1.442695, %v1359_v33 }
 0x578   : > { %v2148_v39 = vpop.eup %2147  ;;  %v1441_v21 = vadd.f32 1.0, %v2146_v28  ;;  %v1750_v28 = vpop.f32.mrf.mxu1 }
 0x579   : > { %v1505_v38 = vsel %vm1504_vm0, %v2144_v10, %v1501_v30  ;;  %v1513_v34 = vmul.f32 %v2148_v39, %v1440_v5  ;;  %2149 = vpow2.f32 %v1973_v27  ;;  %vm1518_vm2 = vweird.f32 %v2148_v39 }
 0x57a   : > { %v1510_v36 = vsel %vm1507_vm1, %v1509_v40, %v1505_v38  ;;  %2151 = vrcp.f32 %v1441_v21  ;;  %vm1519_vm4 = vmor %vm1517_vm3, %vm1518_vm2  ;;  %v1538_v8 = vand.u32 2147483648, %v1441_v21  ;;  %v1536_v60 = vand.u32 2147483647, %v1441_v21 }
 0x57b   : > { %v1793_v41 = vadd.f32 %v1777_v52, %v1510_v36  ;;  %v1514_v42 = vsub.f32 1.0, %v1513_v34  ;;  %vm1532_vm7 = vweird.f32 %v1441_v21  ;;  %v1748_v38 = vadd.f32 %v1747_v15, %v2831_v17 }
 0x57c   : > { %v1539_v63 = vor.u32 1.1754944e-38, %v1538_v8  ;;  %vm1537_vm9 = vcmp.eq.f32.partialorder %v1536_v60, 8.507059e+37 }
 0x57d   : > { %1809 = vst [vmem:[%s2839_s15 + $0x18] sm:$0xff] %v1793_v41  ;;  %v1515_v44 = vmul.f32 %v2148_v39, %v1514_v42 }
 0x57f   : > { %v2150_v43 = vpop.eup %2149  ;;  %v1516_v46 = vadd.f32 %v2148_v39, %v1515_v44 }
 0x580   : > { %v2152_v47 = vpop.eup %2151  ;;  %v1442_v50 = vadd.f32 1.0, %v2150_v43 }
 0x581   : > { %v1520_v13 = vsel %vm1519_vm4, %v2148_v39, %v1516_v46  ;;  %v1528_v49 = vmul.f32 %v2152_v47, %v1441_v21  ;;  %vm1533_vm6 = vweird.f32 %v2152_v47  ;;  %v1781_v46 = vmax.f32 %v1748_v38, 0.0 }
 0x582   : > { %v1525_v53 = vsel %vm1522_vm5, %v1524_v0, %v1520_v13  ;;  %2153 = vrcp.f32 %v1442_v50  ;;  %v1361_v54 = vpop.f32.mrf.mxu0  ;;  %vm1534_vm8 = vmor %vm1532_vm7, %vm1533_vm6  ;;  %v1553_v18 = vand.u32 2147483648, %v1442_v50  ;;  %v1551_v24 = vand.u32 2147483647, %v1442_v50 }
 0x583   : > { %v1794_v3 = vadd.f32 %v1778_v51, %v1525_v53  ;;  %v1529_v56 = vsub.f32 1.0, %v1528_v49  ;;  %v1362_v57 = vadd.f32 %v1361_v54, %v2826_v6  ;;  %vm1547_vm11 = vweird.f32 %v1442_v50 }
 0x584   : > { %v1554_v31 = vor.u32 1.1754944e-38, %v1553_v18  ;;  %vm1552_vm13 = vcmp.eq.f32.partialorder %v1551_v24, 8.507059e+37  ;;  %v1751_v54 = vadd.f32 %v1750_v28, %v2831_v17 }
 0x585   : > { %1810 = vst [vmem:[%s2839_s15 + $0x20] sm:$0xff] %v1794_v3  ;;  %v1530_v59 = vmul.f32 %v2152_v47, %v1529_v56  ;;  %v1974_v29 = vmul.f32 -1.442695, %v1362_v57 }
 0x587   : > { %v1531_v1 = vadd.f32 %v2152_v47, %v1530_v59  ;;  %2155 = vpow2.f32 %v1974_v29 }
 0x588   : > { %v2154_v62 = vpop.eup %2153 }
 0x589   : > { %v1535_v23 = vsel %vm1534_vm8, %v2152_v47, %v1531_v1  ;;  %v1543_v4 = vmul.f32 %v2154_v62, %v1442_v50  ;;  %vm1548_vm10 = vweird.f32 %v2154_v62  ;;  %v1753_v47 = vpop.f32.mrf.mxu1 }
 0x58a   : > { %v1540_v2 = vsel %vm1537_vm9, %v1539_v63, %v1535_v23  ;;  %v1364_v11 = vpop.f32.mrf.mxu0  ;;  %vm1549_vm12 = vmor %vm1547_vm11, %vm1548_vm10 }
 0x58b   : > { %v1795_v12 = vadd.f32 %v1779_v26, %v1540_v2  ;;  %v1544_v9 = vsub.f32 1.0, %v1543_v4  ;;  %v1365_v10 = vadd.f32 %v1364_v11, %v2826_v6 }
 0x58d   : > { %v2156_v5 = vpop.eup %2155  ;;  %1811 = vst [vmem:[%s2839_s15 + $0x28] sm:$0xff] %v1795_v12  ;;  %v1545_v20 = vmul.f32 %v2154_v62, %v1544_v9  ;;  %v1975_v19 = vmul.f32 -1.442695, %v1365_v10  ;;  %v1754_v9 = vadd.f32 %v1753_v47, %v2831_v17 }
 0x58e   : > { %v1443_v7 = vadd.f32 1.0, %v2156_v5 }
 0x58f   : > { %v1546_v55 = vadd.f32 %v2154_v62, %v1545_v20  ;;  %2157 = vpow2.f32 %v1975_v19 }
 0x590   : > { %2159 = vrcp.f32 %v1443_v7  ;;  %v1568_v34 = vand.u32 2147483648, %v1443_v7  ;;  %v1566_v42 = vand.u32 2147483647, %v1443_v7  ;;  %vm1562_vm15 = vweird.f32 %v1443_v7 }
 0x591   : > { %v1550_v32 = vsel %vm1549_vm12, %v2154_v62, %v1546_v55  ;;  %v1782_v62 = vmax.f32 %v1751_v54, 0.0  ;;  %v1756_v15 = vpop.f32.mrf.mxu1 }
 0x592   : > { %v1555_v35 = vsel %vm1552_vm13, %v1554_v31, %v1550_v32  ;;  %v1367_v58 = vpop.f32.mrf.mxu0  ;;  %v1569_v48 = vor.u32 1.1754944e-38, %v1568_v34  ;;  %vm1567_vm1 = vcmp.eq.f32.partialorder %v1566_v42, 8.507059e+37  ;;  %v1783_v31 = vmax.f32 %v1754_v9, 0.0 }
 0x593   : > { %v1796_v33 = vadd.f32 %v1780_v16, %v1555_v35  ;;  %v1368_v25 = vadd.f32 %v1367_v58, %v2826_v6 }
 0x595   : > { %v2158_v30 = vpop.eup %2157  ;;  %1812 = vst [vmem:[%s2839_s15 + $0x30] sm:$0xff] %v1796_v33  ;;  %v1976_v27 = vmul.f32 -1.442695, %v1368_v25 }
 0x596   : > { %v2160_v39 = vpop.eup %2159  ;;  %v1444_v52 = vadd.f32 1.0, %v2158_v30  ;;  %v1757_v30 = vadd.f32 %v1756_v15, %v2831_v17 }
 0x597   : > { %v1558_v40 = vmul.f32 %v2160_v39, %v1443_v7  ;;  %2161 = vpow2.f32 %v1976_v27  ;;  %vm1563_vm14 = vweird.f32 %v2160_v39 }
 0x598   : > { %2163 = vrcp.f32 %v1444_v52  ;;  %vm1564_vm0 = vmor %vm1562_vm15, %vm1563_vm14  ;;  %v1583_v3 = vand.u32 2147483648, %v1444_v52  ;;  %v1581_v22 = vand.u32 2147483647, %v1444_v52  ;;  %vm1577_vm3 = vweird.f32 %v1444_v52 }
 0x599   : > { %v1559_v21 = vsub.f32 1.0, %v1558_v40  ;;  %v1759_v27 = vpop.f32.mrf.mxu1 }
 0x59a   : > { %v1370_v36 = vpop.f32.mrf.mxu0  ;;  %v1584_v63 = vor.u32 1.1754944e-38, %v1583_v3  ;;  %vm1582_vm5 = vcmp.eq.f32.partialorder %v1581_v22, 8.507059e+37 }
 0x59b   : > { %v1560_v41 = vmul.f32 %v2160_v39, %v1559_v21  ;;  %v1371_v37 = vadd.f32 %v1370_v36, %v2826_v6 }
 0x59d   : > { %v2162_v61 = vpop.eup %2161  ;;  %v1561_v44 = vadd.f32 %v2160_v39, %v1560_v41  ;;  %v1977_v45 = vmul.f32 -1.442695, %v1371_v37  ;;  %v1784_v37 = vmax.f32 %v1757_v30, 0.0 }
 0x59e   : > { %v2164_v43 = vpop.eup %2163  ;;  %v1445_v0 = vadd.f32 1.0, %v2162_v61 }
 0x59f   : > { %v1565_v50 = vsel %vm1564_vm0, %v2160_v39, %v1561_v44  ;;  %v1573_v51 = vmul.f32 %v2164_v43, %v1444_v52  ;;  %2165 = vpow2.f32 %v1977_v45  ;;  %vm1578_vm2 = vweird.f32 %v2164_v43 }
 0x5a0   : > { %v1570_v13 = vsel %vm1567_vm1, %v1569_v48, %v1565_v50  ;;  %2167 = vrcp.f32 %v1445_v0  ;;  %vm1579_vm4 = vmor %vm1577_vm3, %vm1578_vm2  ;;  %v1598_v10 = vand.u32 2147483648, %v1445_v0  ;;  %v1596_v5 = vand.u32 2147483647, %v1445_v0 }
 0x5a1   : > { %v1797_v49 = vadd.f32 %v1781_v46, %v1570_v13  ;;  %v1574_v53 = vsub.f32 1.0, %v1573_v51  ;;  %vm1592_vm7 = vweird.f32 %v1445_v0  ;;  %v1762_v54 = vpop.f32.mrf.mxu1 }
 0x5a2   : > { %v1373_v56 = vpop.f32.mrf.mxu0  ;;  %v1599_v16 = vor.u32 1.1754944e-38, %v1598_v10  ;;  %vm1597_vm9 = vcmp.eq.f32.partialorder %v1596_v5, 8.507059e+37 }
 0x5a3   : > { %1813 = vst [vmem:[%s2839_s15 + $0x38] sm:$0xff] %v1797_v49  ;;  %v1575_v57 = vmul.f32 %v2164_v43, %v1574_v53  ;;  %v1374_v8 = vadd.f32 %v1373_v56, %v2826_v6 }
 0x5a5   : > { %v2166_v59 = vpop.eup %2165  ;;  %v1576_v60 = vadd.f32 %v2164_v43, %v1575_v57  ;;  %v1978_v29 = vmul.f32 -1.442695, %v1374_v8 }
 0x5a6   : > { %v2168_v1 = vpop.eup %2167  ;;  %v1446_v26 = vadd.f32 1.0, %v2166_v59 }
 0x5a7   : > { %v1580_v23 = vsel %vm1579_vm4, %v2164_v43, %v1576_v60  ;;  %v1588_v4 = vmul.f32 %v2168_v1, %v1445_v0  ;;  %2169 = vpow2.f32 %v1978_v29  ;;  %vm1593_vm6 = vweird.f32 %v2168_v1 }
 0x5a8   : > { %v1585_v2 = vsel %vm1582_vm5, %v1584_v63, %v1580_v23  ;;  %2171 = vrcp.f32 %v1446_v26  ;;  %vm1594_vm8 = vmor %vm1592_vm7, %vm1593_vm6  ;;  %v1613_v39 = vand.u32 2147483648, %v1446_v26  ;;  %v1611_v21 = vand.u32 2147483647, %v1446_v26 }
 0x5a9   : > { %v1798_v11 = vadd.f32 %v1782_v62, %v1585_v2  ;;  %v1589_v12 = vsub.f32 1.0, %v1588_v4  ;;  %vm1607_vm11 = vweird.f32 %v1446_v26  ;;  %v1760_v0 = vadd.f32 %v1759_v27, %v2831_v17 }
 0x5aa   : > { %v1376_v14 = vpop.f32.mrf.mxu0  ;;  %v1614_v61 = vor.u32 1.1754944e-38, %v1613_v39  ;;  %vm1612_vm13 = vcmp.eq.f32.partialorder %v1611_v21, 8.507059e+37  ;;  %v1763_v23 = vadd.f32 %v1762_v54, %v2831_v17 }
 0x5ab   : > { %1814 = vst [vmem:[%s2839_s15 + $0x40] sm:$0xff] %v1798_v11  ;;  %v1590_v18 = vmul.f32 %v2168_v1, %v1589_v12  ;;  %v1377_v20 = vadd.f32 %v1376_v14, %v2826_v6  ;;  %v1785_v8 = vmax.f32 %v1760_v0, 0.0 }
 0x5ac   : > { %v1786_v5 = vmax.f32 %v1763_v23, 0.0 }
 0x5ad   : > { %v2170_v24 = vpop.eup %2169  ;;  %v1591_v19 = vadd.f32 %v2168_v1, %v1590_v18  ;;  %v1979_v7 = vmul.f32 -1.442695, %v1377_v20  ;;  %v1765_v20 = vpop.f32.mrf.mxu1 }
 0x5ae   : > { %v2172_v55 = vpop.eup %2171  ;;  %v1447_v32 = vadd.f32 1.0, %v2170_v24 }
 0x5af   : > { %v1595_v35 = vsel %vm1594_vm8, %v2168_v1, %v1591_v19  ;;  %v1603_v58 = vmul.f32 %v2172_v55, %v1446_v26  ;;  %2173 = vpow2.f32 %v1979_v7  ;;  %vm1608_vm10 = vweird.f32 %v2172_v55 }
 0x5b0   : > { %v1600_v33 = vsel %vm1597_vm9, %v1599_v16, %v1595_v35  ;;  %2175 = vrcp.f32 %v1447_v32  ;;  %vm1609_vm12 = vmor %vm1607_vm11, %vm1608_vm10  ;;  %v1628_v50 = vand.u32 2147483648, %v1447_v32  ;;  %v1626_v49 = vand.u32 2147483647, %v1447_v32 }
 0x5b1   : > { %v1799_v25 = vadd.f32 %v1783_v31, %v1600_v33  ;;  %v1604_v28 = vsub.f32 1.0, %v1603_v58  ;;  %vm1622_vm15 = vweird.f32 %v1447_v32  ;;  %v1766_v35 = vadd.f32 %v1765_v20, %v2831_v17 }
 0x5b2   : > { %v1379_v52 = vpop.f32.mrf.mxu0  ;;  %v1629_v59 = vor.u32 1.1754944e-38, %v1628_v50  ;;  %vm1627_vm1 = vcmp.eq.f32.partialorder %v1626_v49, 8.507059e+37  ;;  %v1771_v50 = vpop.f32.mrf.mxu2 }
 0x5b3   : > { %1815 = vst [vmem:[%s2839_s15 + $0x48] sm:$0xff] %v1799_v25  ;;  %v1605_v40 = vmul.f32 %v2172_v55, %v1604_v28  ;;  %v1380_v38 = vadd.f32 %v1379_v52, %v2826_v6  ;;  %v1787_v52 = vmax.f32 %v1766_v35, 0.0  ;;  %v1772_v54 = vadd.f32 %v1771_v50, %v2831_v17 }
 0x5b5   : > { %v2174_v34 = vpop.eup %2173  ;;  %v1606_v36 = vadd.f32 %v2172_v55, %v1605_v40  ;;  %v1980_v41 = vmul.f32 -1.442695, %v1380_v38  ;;  %v1768_v38 = vpop.f32.mrf.mxu1 }
 0x5b6   : > { %v2176_v42 = vpop.eup %2175  ;;  %v1448_v44 = vadd.f32 1.0, %v2174_v34 }
 0x5b7   : > { %v1610_v45 = vsel %vm1609_vm12, %v2172_v55, %v1606_v36  ;;  %v1618_v43 = vmul.f32 %v2176_v42, %v1447_v32  ;;  %2177 = vpow2.f32 %v1980_v41  ;;  %vm1623_vm14 = vweird.f32 %v2176_v42 }
 0x5b8   : > { %v1615_v46 = vsel %vm1612_vm13, %v1614_v61, %v1610_v45  ;;  %2179 = vrcp.f32 %v1448_v44  ;;  %vm1624_vm0 = vmor %vm1622_vm15, %vm1623_vm14  ;;  %v1643_v4 = vand.u32 2147483648, %v1448_v44  ;;  %v1641_v11 = vand.u32 2147483647, %v1448_v44 }
 0x5b9   : > { %v1800_v47 = vadd.f32 %v1784_v37, %v1615_v46  ;;  %v1619_v48 = vsub.f32 1.0, %v1618_v43  ;;  %vm1637_vm3 = vweird.f32 %v1448_v44  ;;  %v1769_v37 = vadd.f32 %v1768_v38, %v2831_v17 }
 0x5ba   : > { %v1382_v51 = vpop.f32.mrf.mxu0  ;;  %v1644_v24 = vor.u32 1.1754944e-38, %v1643_v4  ;;  %vm1642_vm5 = vcmp.eq.f32.partialorder %v1641_v11, 8.507059e+37 }
 0x5bb   : > { %1816 = vst [vmem:[%s2839_s15 + $0x50] sm:$0xff] %v1800_v47  ;;  %v1620_v13 = vmul.f32 %v2176_v42, %v1619_v48  ;;  %v1383_v53 = vadd.f32 %v1382_v51, %v2826_v6  ;;  %v1788_v47 = vmax.f32 %v1769_v37, 0.0 }
 0x5bd   : > { %v2178_v3 = vpop.eup %2177  ;;  %v1621_v56 = vadd.f32 %v2176_v42, %v1620_v13  ;;  %v1981_v57 = vmul.f32 -1.442695, %v1383_v53 }
 0x5be   : > { %v2180_v22 = vpop.eup %2179  ;;  %v1449_v60 = vadd.f32 1.0, %v2178_v3 }
 0x5bf   : > { %v1625_v29 = vsel %vm1624_vm0, %v2176_v42, %v1621_v56  ;;  %v1633_v1 = vmul.f32 %v2180_v22, %v1448_v44  ;;  %2181 = vpow2.f32 %v1981_v57  ;;  %vm1638_vm2 = vweird.f32 %v2180_v22 }
 0x5c0   : > { %v1630_v62 = vsel %vm1627_vm1, %v1629_v59, %v1625_v29  ;;  %2183 = vrcp.f32 %v1449_v60  ;;  %vm1639_vm4 = vmor %vm1637_vm3, %vm1638_vm2  ;;  %v1656_v33 = vand.u32 2147483647, %v1449_v60  ;;  %vm1652_vm7 = vweird.f32 %v1449_v60 }
 0x5c1   : > { %v1801_v63 = vadd.f32 %v1785_v8, %v1630_v62  ;;  %v1634_v26 = vsub.f32 1.0, %v1633_v1  ;;  %v1789_v8 = vmax.f32 %v1772_v54, 0.0 }
 0x5c2   : > { %v1385_v15 = vpop.f32.mrf.mxu0  ;;  %vm1657_vm9 = vcmp.eq.f32.partialorder %v1656_v33, 8.507059e+37 }
 0x5c3   : > { %1817 = vst [vmem:[%s2839_s15 + $0x58] sm:$0xff] %v1801_v63  ;;  %v1635_v2 = vmul.f32 %v2180_v22, %v1634_v26  ;;  %v1386_v12 = vadd.f32 %v1385_v15, %v2826_v6  ;;  %v1658_v6 = vand.u32 2147483648, %v1449_v60 }
 0x5c5   : > { %v2182_v9 = vpop.eup %2181  ;;  %v1636_v10 = vadd.f32 %v2180_v22, %v1635_v2  ;;  %v1982_v14 = vmul.f32 -1.442695, %v1386_v12  ;;  %v1659_v27 = vor.u32 1.1754944e-38, %v1658_v6 }
 0x5c6   : > { %v2184_v18 = vpop.eup %2183  ;;  %v1450_v19 = vadd.f32 1.0, %v2182_v9 }
 0x5c7   : > { %v1640_v7 = vsel %vm1639_vm4, %v2180_v22, %v1636_v10  ;;  %v1648_v55 = vmul.f32 %v2184_v18, %v1449_v60  ;;  %2185 = vpow2.f32 %v1982_v14  ;;  %vm1653_vm6 = vweird.f32 %v2184_v18 }
 0x5c8   : > { %v1645_v31 = vsel %vm1642_vm5, %v1644_v24, %v1640_v7  ;;  %2187 = vrcp.f32 %v1450_v19  ;;  %vm1654_vm8 = vmor %vm1652_vm7, %vm1653_vm6  ;;  %v1673_v42 = vand.u32 2147483648, %v1450_v19  ;;  %v1671_v44 = vand.u32 2147483647, %v1450_v19 }
 0x5c9   : > { %v1802_v16 = vadd.f32 %v1786_v5, %v1645_v31  ;;  %v1649_v32 = vsub.f32 1.0, %v1648_v55  ;;  %vm1667_vm11 = vweird.f32 %v1450_v19 }
 0x5ca   : > { %v1674_v46 = vor.u32 1.1754944e-38, %v1673_v42  ;;  %vm1672_vm13 = vcmp.eq.f32.partialorder %v1671_v44, 8.507059e+37 }
 0x5cb   : > { %1818 = vst [vmem:[%s2839_s15 + $0x60] sm:$0xff] %v1802_v16  ;;  %v1650_v58 = vmul.f32 %v2184_v18, %v1649_v32 }
 0x5cd   : > { %v2186_v25 = vpop.eup %2185  ;;  %v1651_v28 = vadd.f32 %v2184_v18, %v1650_v58 }
 0x5ce   : > { %v2188_v30 = vpop.eup %2187  ;;  %v1451_v39 = vadd.f32 1.0, %v2186_v25 }
 0x5cf   : > { %v1655_v40 = vsel %vm1654_vm8, %v2184_v18, %v1651_v28  ;;  %v1663_v21 = vmul.f32 %v2188_v30, %v1450_v19  ;;  %vm1668_vm10 = vweird.f32 %v2188_v30 }
 0x5d0   : > { %v1660_v34 = vsel %vm1657_vm9, %v1659_v27, %v1655_v40  ;;  %2189 = vrcp.f32 %v1451_v39  ;;  %vm1669_vm12 = vmor %vm1667_vm11, %vm1668_vm10  ;;  %v1688_v53 = vand.u32 2147483648, %v1451_v39  ;;  %v1686_v56 = vand.u32 2147483647, %v1451_v39 }
 0x5d1   : > { %v1803_v36 = vadd.f32 %v1787_v52, %v1660_v34  ;;  %v1664_v41 = vsub.f32 1.0, %v1663_v21  ;;  %vm1682_vm15 = vweird.f32 %v1451_v39 }
 0x5d2   : > { %v1689_v22 = vor.u32 1.1754944e-38, %v1688_v53  ;;  %vm1687_vm1 = vcmp.eq.f32.partialorder %v1686_v56, 8.507059e+37 }
 0x5d3   : > { %1819 = vst [vmem:[%s2839_s15 + $0x68] sm:$0xff] %v1803_v36  ;;  %v1665_v61 = vmul.f32 %v2188_v30, %v1664_v41 }
 0x5d5   : > { %v1666_v45 = vadd.f32 %v2188_v30, %v1665_v61 }
 0x5d6   : > { %v2190_v43 = vpop.eup %2189 }
 0x5d7   : > { %v1670_v48 = vsel %vm1669_vm12, %v2188_v30, %v1666_v45  ;;  %v1678_v0 = vmul.f32 %v2190_v43, %v1451_v39  ;;  %vm1683_vm14 = vweird.f32 %v2190_v43 }
 0x5d8   : > { %v1675_v51 = vsel %vm1672_vm13, %v1674_v46, %v1670_v48  ;;  %vm1684_vm0 = vmor %vm1682_vm15, %vm1683_vm14 }
 0x5d9   : > { %v1804_v13 = vadd.f32 %v1788_v47, %v1675_v51  ;;  %v1679_v49 = vsub.f32 1.0, %v1678_v0 }
 0x5db   : > { %1820 = vst [vmem:[%s2839_s15 + $0x70] sm:$0xff] %v1804_v13  ;;  %v1680_v3 = vmul.f32 %v2190_v43, %v1679_v49 }
 0x5dd   : > { %v1681_v57 = vadd.f32 %v2190_v43, %v1680_v3 }
 0x5df   : > { %v1685_v59 = vsel %vm1684_vm0, %v2190_v43, %v1681_v57 }
 0x5e0   : > { %v1690_v60 = vsel %vm1687_vm1, %v1689_v22, %v1685_v59 }
 0x5e1   : > { %v1805_v17 = vadd.f32 %v1789_v8, %v1690_v60 }
 0x5e3   : > { %1821 = vst [vmem:[%s2839_s15 + $0x78] sm:$0xff] %v1805_v17 }
 0x5e4   : > { %2249 = shalt.err (!%p2246_p8)
}
 0x5e5   : > { %s2294_s13 = smov 128   ;;  %s2295_s14 = smov 8  }
 0x5e6   : > { %2043 = dma.vmem_to_hbm [thread:$0]  (%p2364_p5), %s1836_s22, 2048, %s1838_s26, %s1823_s30, %s2294_s13, %s2294_s13, %s2295_s14  }
 0x5e7 PF: > { %p2055_p9 = scmp.ge.s32.totalorder %s2288_s21, 2  ;;  %s1852_s15 = sand.u32 1, %s2276_s18  }
 0x5e8   : > { %s1853_s16 = scalar_lea.sflag [#allocation4], %s1852_s15 }
 0x5e9   : > { %p2050_p10 = pnand %p2055_p9, %p2368_p6 }
 0x5eb   : > { %p2051_p11 = pneg %p2050_p10 }
 0x5ed   : > { %2271 = dma.done.wait (%p2051_p11), %s1853_s16, 2048  }
 0x5ee   : > { %2273 = vsyncadd (%p2051_p11), %s1853_s16, 4294965248  ;;  %p16_p12 = scmp.ge.s32.totalorder %s2351_s24, 4   ;;  %s2925_s18 = smov %s2280_s19 }
 0x5ef   : > { %s2926_s19 = smov %s2284_s20  ;;  %s2927_s20 = smov %s2362_s27 }
 0x5f0   : > { %s2928_s21 = smov %s2351_s24  ;;  %18 = sbr.rel (!%p16_p12) target bundleno = 4 (0x4), region = 83 }
 0x5f5   :  { %1859 = vsyncpa [#allocation3], 1 }
 0x5f6   :  { %1861 = vsyncpa [#allocation3 + $0x1], 1 }
 0x5f7   :  { %1862 = vsyncpa [#allocation4], 1 }
 0x5f8   :  { %1864 = vsyncpa [#allocation4 + $0x1], 1 }

</bundles_post_ra>
